<compile_context>
chip_gen: v5e
topology: v5e:2x2
jax: 0.10.0
libtpu: 0.0.40
codegen_flags: <defaults>
</compile_context>

<pallas_src>
from functools import partial

import jax
import jax.numpy as jnp
from jax import lax
from jax.experimental import pallas as pl
from jax.experimental.pallas import tpu as pltpu

FLOAT_INF = -1000.0
LANE = 128              # lane width; batch sits on the lane axis inside the kernel
MAX_BLOCK_LANES = 4     # batch block up to 4*128 = 512 lanes


# ----------------------------------------------------------------------------
# Fused kernel: emission projection + CRF forward algorithm + gold emission score
# ----------------------------------------------------------------------------
def make_crf_fused_kernel(start_tag):
    def kernel(x_ref, w_ref, b_ref, a_ref, a_end_ref, lab_ref, mask_ref, out_ref):
        # x_ref    : (H, T*Nb)   lstm hiddens for this batch block, column = t*Nb + n (lane-dense)
        # w_ref    : (C, H)      hidden2tag weight (transposed), resident, same dtype as x
        # b_ref    : (C, 1)      hidden2tag bias (column, f32)
        # a_ref    : (C, C)      CRF transition A[j, i] = score(i -> j)
        # a_end_ref: (C, 1)      A[end_tag, :] as a column
        # lab_ref  : (T, Nb)     gold labels, time-major, batch on lanes (int32)
        # mask_ref : (T, Nb)     sequence mask, time-major, batch on lanes (f32)
        # out_ref  : (1, Nb)     log Z - gold emission score (lane-dense)
        T, Nb = lab_ref.shape
        C = a_ref.shape[0]

        # ---- all T emission logits in ONE MXU matmul; bias broadcast added once ----
        logits_all = lax.dot_general(
            w_ref[...], x_ref[...], (((1,), (0,)), ((), ())),
            preferred_element_type=jnp.float32) + b_ref[...]            # (C, T*Nb) f32

        A3 = a_ref[...][:, :, None]                                      # (C, C, 1), hoisted
        labels = lab_ref[...]                                            # (T, Nb) int32
        maskf = mask_ref[...]                                            # (T, Nb) f32

        iota_c = lax.broadcasted_iota(jnp.int32, (C, Nb), 0)
        alpha = jnp.where(iota_c == start_tag, 0.0, FLOAT_INF).astype(jnp.float32)  # (C, Nb)
        e_cn = jnp.zeros((C, Nb), jnp.float32)                           # gold emission accum

        # Fully unrolled recurrence over time (T is a small static constant).
        for t in range(T):
            logit_t = logits_all[:, t * Nb:(t + 1) * Nb]                 # (C, Nb), lane-aligned slice
            m_bool = maskf[t:t + 1, :] > 0.0                             # (1, Nb) bool

            # forward algorithm: nxt[j,n] = logit[j,n] + logsumexp_i(alpha[i,n] + A[j,i])
            s = alpha[None, :, :] + A3                                   # (C, C, Nb)
            mx = jnp.max(s, axis=1, keepdims=True)                       # (C, 1, Nb)
            lse = jnp.log(jnp.sum(jnp.exp(s - mx), axis=1)) + mx[:, 0, :]  # (C, Nb)
            nxt = lse + logit_t
            alpha = jnp.where(m_bool, nxt, alpha)                        # select, not arith blend

            # gold emission contribution: pick logit[y_t] on valid steps (select, reduce later)
            sel = jnp.logical_and(iota_c == labels[t:t + 1, :], m_bool)  # (C, Nb)
            e_cn = e_cn + jnp.where(sel, logit_t, 0.0)

        fin = alpha + a_end_ref[...]                                     # (C, Nb)
        mxf = jnp.max(fin, axis=0, keepdims=True)                        # (1, Nb)
        total = jnp.log(jnp.sum(jnp.exp(fin - mxf), axis=0, keepdims=True)) + mxf
        e_sum = jnp.sum(e_cn, axis=0, keepdims=True)                     # single sublane reduce
        out_ref[...] = total - e_sum

    return kernel


# ----------------------------------------------------------------------------
# Wrapper: CRFDecoder.forward -> scalar mean loss
# ----------------------------------------------------------------------------
@partial(jax.jit, static_argnames=("start_tag", "end_tag"))
def crf_decoder_forward(lstm_result, x_sentence_lens, y, w, b, transition,
                        start_tag, end_tag):
    N, T, H = lstm_result.shape
    C = w.shape[1]

    mask = (jnp.arange(T)[None, :] < x_sentence_lens[:, None]).astype(jnp.float32)  # (N, T)
    y_i = y.astype(jnp.int32)

    # ---- gold transition score: tiny XLA gather (kept out of the kernel on purpose) ----
    lab_ext = jnp.concatenate(
        [jnp.full((N, 1), start_tag, jnp.int32), y_i,
         jnp.full((N, 1), end_tag, jnp.int32)], axis=1)           # (N, T+2)
    mask_wse = jnp.concatenate(
        [jnp.ones((N, 1), jnp.int32), mask.astype(jnp.int32),
         jnp.ones((N, 1), jnp.int32)], axis=1)                    # (N, T+2)
    lab_ext = (1 - mask_wse) * end_tag + mask_wse * lab_ext
    mask_ws = jnp.concatenate([jnp.ones((N, 1), jnp.float32), mask], axis=1)  # (N, T+1)
    t_score = jnp.sum(transition[lab_ext[:, 1:], lab_ext[:, :-1]] * mask_ws, axis=1)  # (N,)

    # ---- pick batch block: big blocks for large batches, but keep grid >= 2 (v7x megacore) ----
    n128 = pl.cdiv(N, LANE)
    nb_units = min(MAX_BLOCK_LANES, max(1, n128 // 2)) if n128 >= 2 else 1
    Nb = LANE * nb_units
    N_pad = pl.cdiv(N, Nb) * Nb
    pad = N_pad - N
    num_blocks = N_pad // Nb

    # ---- lane-dense x layout: (H, num_blocks * T * Nb), column = block*T*Nb + t*Nb + n ----
    # Native dtype (no f32 up-cast): halves HBM traffic when the caller feeds bf16.
    x_p = jnp.pad(lstm_result, ((0, pad), (0, 0), (0, 0)))        # (N_pad, T, H)
    x_2d = jnp.transpose(x_p.reshape(num_blocks, Nb, T, H),
                         (3, 0, 2, 1)).reshape(H, num_blocks * T * Nb)

    lab_tm = jnp.pad(y_i, ((0, pad), (0, 0))).T                   # (T, N_pad) int32
    mask_tm = jnp.pad(mask, ((0, pad), (0, 0))).T                 # (T, N_pad) f32

    w_ct = jnp.transpose(w).astype(x_2d.dtype)                    # (C, H), same dtype as x
    b_col = b.astype(jnp.float32).reshape(C, 1)                   # (C, 1)
    A_f32 = transition.astype(jnp.float32)                        # (C, C)
    a_end = A_f32[end_tag].reshape(C, 1)                          # (C, 1)

    kernel = make_crf_fused_kernel(start_tag)
    logz_minus_e = pl.pallas_call(
        kernel,
        out_shape=jax.ShapeDtypeStruct((1, N_pad), jnp.float32),
        grid=(num_blocks,),
        in_specs=[
            pl.BlockSpec((H, T * Nb), lambda i: (0, i)),          # lstm slab, lane-dense
            pl.BlockSpec((C, H), lambda i: (0, 0)),               # W^T (resident)
            pl.BlockSpec((C, 1), lambda i: (0, 0)),               # bias column
            pl.BlockSpec((C, C), lambda i: (0, 0)),               # transition
            pl.BlockSpec((C, 1), lambda i: (0, 0)),               # A[end_tag] column
            pl.BlockSpec((T, Nb), lambda i: (0, i)),              # labels (time-major)
            pl.BlockSpec((T, Nb), lambda i: (0, i)),              # mask (time-major)
        ],
        out_specs=pl.BlockSpec((1, Nb), lambda i: (0, i)),        # lane-dense output
        compiler_params=pltpu.CompilerParams(
            dimension_semantics=("parallel",)),
    )(x_2d, w_ct, b_col, A_f32, a_end, lab_tm, mask_tm)

    losses = logz_minus_e[0, :N] - t_score                        # (N,)
    return jnp.mean(losses)


# ----------------------------------------------------------------------------
# Pure-JAX reference (mirrors the PyTorch semantics) for a correctness check
# ----------------------------------------------------------------------------
def reference_loss(lstm_result, lens, y, w, b, A, start_tag, end_tag):
    N, T, H = lstm_result.shape
    C = w.shape[1]
    em = jnp.einsum('nth,hc->ntc', lstm_result, w) + b[None, None, :]
    mask = (jnp.arange(T)[None, :] < lens[:, None]).astype(jnp.float32)

    alpha = jnp.full((N, C), FLOAT_INF, jnp.float32).at[:, start_tag].set(0.0)
    for t in range(T):
        s = alpha[:, None, :] + A[None, :, :] + em[:, t, :, None]
        nxt = jax.nn.logsumexp(s, axis=2)
        m = mask[:, t:t + 1]
        alpha = m * nxt + (1 - m) * alpha
    total = jax.nn.logsumexp(alpha + A[end_tag][None, :], axis=1)

    lab_ext = jnp.concatenate(
        [jnp.full((N, 1), start_tag, jnp.int32), y.astype(jnp.int32),
         jnp.full((N, 1), end_tag, jnp.int32)], axis=1)
    mask_wse = jnp.concatenate(
        [jnp.ones((N, 1), jnp.int32), mask.astype(jnp.int32),
         jnp.ones((N, 1), jnp.int32)], axis=1)
    lab_ext = (1 - mask_wse) * end_tag + mask_wse * lab_ext
    trans_vals = A[lab_ext[:, 1:], lab_ext[:, :-1]]
    mask_ws = jnp.concatenate([jnp.ones((N, 1), jnp.float32), mask], axis=1)
    t_score = jnp.sum(trans_vals * mask_ws, axis=1)
    e_score = jnp.sum(jnp.take_along_axis(em, y[:, :, None], axis=2)[:, :, 0] * mask,
                      axis=1)
    return jnp.mean(total - (t_score + e_score))


if __name__ == "__main__":
    # Small shapes consistent with the module: batch=2, seq=8, hidden=32, classes=8
    N, T, H, C = 2, 8, 32, 8          # C = real_class_num(6) + START + END
    start_tag, end_tag = C - 2, C - 1

    key = jax.random.PRNGKey(0)
    kw, kb, kt, kx, ky = jax.random.split(key, 5)

    # deterministic parameter init (synthetic, shapes from __init__)
    W = jax.random.normal(kw, (H, C), jnp.float32) * 0.1   # hidden2tag.weight^T
    b = jax.random.normal(kb, (C,), jnp.float32) * 0.01    # hidden2tag.bias
    A = jax.random.normal(kt, (C, C), jnp.float32)         # crf.transition
    A = A.at[:, end_tag].set(FLOAT_INF)
    A = A.at[start_tag, :].set(FLOAT_INF)

    # inputs
    lstm_result = jax.random.normal(kx, (N, T, H), jnp.float32)
    x_sentence_lens = jnp.array([T, 5], jnp.int32)
    y = jax.random.randint(ky, (N, T), 0, C - 2, jnp.int32)   # real labels only

    loss = crf_decoder_forward(lstm_result, x_sentence_lens, y, W, b, A,
                               start_tag, end_tag)
    loss = jax.block_until_ready(loss)

    ref = reference_loss(lstm_result, x_sentence_lens, y, W, b, A,
                         start_tag, end_tag)
    ref = jax.block_until_ready(ref)

    assert jnp.isfinite(loss), "loss is not finite"
    assert jnp.allclose(loss, ref, rtol=1e-4, atol=1e-3), (loss, ref)
    print("KERNEL_OK")
</pallas_src>

<mosaic_0001>
module attributes {stable_mosaic.version = 11 : i64} {
  func.func @kernel(%arg0: i32, %arg1: memref<32x1024xf32, #tpu.memory_space<vmem>>, %arg2: memref<8x32xf32, #tpu.memory_space<vmem>>, %arg3: memref<8x1xf32, #tpu.memory_space<vmem>>, %arg4: memref<8x8xf32, #tpu.memory_space<vmem>>, %arg5: memref<8x1xf32, #tpu.memory_space<vmem>>, %arg6: memref<8x128xi32, #tpu.memory_space<vmem>>, %arg7: memref<8x128xf32, #tpu.memory_space<vmem>>, %arg8: memref<1x128xf32, #tpu.memory_space<vmem>>) attributes {dimension_semantics = [#tpu.dimension_semantics<parallel>], iteration_bounds = array<i64: 1>, scalar_prefetch = 0 : i64, scratch_operands = 0 : i64, tpu.core_type = #tpu.core_type<tc>, window_params = [{transform_indices = @transform_0, window_bounds = array<i64: 32, 1024>}, {pipeline_mode = #tpu.pipeline_mode<synchronous>, transform_indices = @transform_1, window_bounds = array<i64: 8, 32>}, {pipeline_mode = #tpu.pipeline_mode<synchronous>, transform_indices = @transform_2, window_bounds = array<i64: 8, 1>}, {pipeline_mode = #tpu.pipeline_mode<synchronous>, transform_indices = @transform_3, window_bounds = array<i64: 8, 8>}, {pipeline_mode = #tpu.pipeline_mode<synchronous>, transform_indices = @transform_4, window_bounds = array<i64: 8, 1>}, {transform_indices = @transform_5, window_bounds = array<i64: 8, 128>}, {transform_indices = @transform_6, window_bounds = array<i64: 8, 128>}, {transform_indices = @transform_7, window_bounds = array<i64: 1, 128>}]} {
    %c0 = arith.constant 0 : index
    %c0_0 = arith.constant 0 : index
    %0 = vector.load %arg2[%c0, %c0_0] : memref<8x32xf32, #tpu.memory_space<vmem>>, vector<8x32xf32>
    %c0_1 = arith.constant 0 : index
    %c0_2 = arith.constant 0 : index
    %1 = vector.load %arg1[%c0_1, %c0_2] : memref<32x1024xf32, #tpu.memory_space<vmem>>, vector<32x1024xf32>
    %cst = arith.constant dense<0.000000e+00> : vector<8x1024xf32>
    %2 = tpu.matmul %0, %1, %cst {dimension_numbers = #tpu.dot_dimension_numbers<[1], [0], [0], [1], [0, 0, 1, 1], [], []>} : vector<8x32xf32>, vector<32x1024xf32>, vector<8x1024xf32> -> vector<8x1024xf32>
    %c0_3 = arith.constant 0 : index
    %c0_4 = arith.constant 0 : index
    %3 = vector.load %arg3[%c0_3, %c0_4] : memref<8x1xf32, #tpu.memory_space<vmem>>, vector<8x1xf32>
    %4 = vector.broadcast %3 : vector<8x1xf32> to vector<8x1024xf32>
    %5 = arith.addf %2, %4 : vector<8x1024xf32>
    %c0_5 = arith.constant 0 : index
    %c0_6 = arith.constant 0 : index
    %6 = vector.load %arg4[%c0_5, %c0_6] : memref<8x8xf32, #tpu.memory_space<vmem>>, vector<8x8xf32>
    %7 = vector.shape_cast %6 : vector<8x8xf32> to vector<8x8x1xf32>
    %c0_7 = arith.constant 0 : index
    %c0_8 = arith.constant 0 : index
    %8 = vector.load %arg6[%c0_7, %c0_8] : memref<8x128xi32, #tpu.memory_space<vmem>>, vector<8x128xi32>
    %c0_9 = arith.constant 0 : index
    %c0_10 = arith.constant 0 : index
    %9 = vector.load %arg7[%c0_9, %c0_10] : memref<8x128xf32, #tpu.memory_space<vmem>>, vector<8x128xf32>
    %10 = tpu.iota {dimensions = array<i32: 0>} : vector<8x128xi32>
    %c6_i32 = arith.constant 6 : i32
    %11 = vector.broadcast %c6_i32 : i32 to vector<8x128xi32>
    %12 = arith.cmpi eq, %10, %11 : vector<8x128xi32>
    %cst_11 = arith.constant 0.000000e+00 : f32
    %cst_12 = arith.constant -1.000000e+03 : f32
    %13 = vector.broadcast %cst_11 : f32 to vector<8x128xf32>
    %14 = vector.broadcast %cst_12 : f32 to vector<8x128xf32>
    %15 = arith.select %12, %13, %14 : vector<8x128xi1>, vector<8x128xf32>
    %cst_13 = arith.constant 0.000000e+00 : f32
    %16 = vector.broadcast %cst_13 : f32 to vector<8x128xf32>
    %17 = vector.extract_strided_slice %5 {offsets = [0, 0], sizes = [8, 128], strides = [1, 1]} : vector<8x1024xf32> to vector<8x128xf32>
    %18 = vector.extract_strided_slice %9 {offsets = [0, 0], sizes = [1, 128], strides = [1, 1]} : vector<8x128xf32> to vector<1x128xf32>
    %cst_14 = arith.constant 0.000000e+00 : f32
    %19 = vector.broadcast %cst_14 : f32 to vector<1x128xf32>
    %20 = arith.cmpf ogt, %18, %19 : vector<1x128xf32>
    %21 = vector.shape_cast %15 : vector<8x128xf32> to vector<1x8x128xf32>
    %22 = vector.broadcast %21 : vector<1x8x128xf32> to vector<8x8x128xf32>
    %23 = vector.broadcast %7 : vector<8x8x1xf32> to vector<8x8x128xf32>
    %24 = arith.addf %22, %23 : vector<8x8x128xf32>
    %cst_15 = arith.constant dense<0xFF800000> : vector<8x128xf32>
    %25 = vector.multi_reduction <maximumf>, %24, %cst_15 [1] : vector<8x8x128xf32> to vector<8x128xf32>
    %26 = vector.shape_cast %25 : vector<8x128xf32> to vector<8x1x128xf32>
    %27 = vector.broadcast %26 : vector<8x1x128xf32> to vector<8x8x128xf32>
    %28 = arith.subf %24, %27 : vector<8x8x128xf32>
    %29 = math.exp %28 : vector<8x8x128xf32>
    %cst_16 = arith.constant dense<0.000000e+00> : vector<8x128xf32>
    %30 = vector.multi_reduction <add>, %29, %cst_16 [1] : vector<8x8x128xf32> to vector<8x128xf32>
    %31 = math.log %30 : vector<8x128xf32>
    %32 = vector.shape_cast %26 : vector<8x1x128xf32> to vector<8x128xf32>
    %33 = arith.addf %31, %32 : vector<8x128xf32>
    %34 = arith.addf %33, %17 : vector<8x128xf32>
    %35 = vector.shape_cast %20 : vector<1x128xi1> to vector<1x128xi1>
    %36 = vector.broadcast %35 : vector<1x128xi1> to vector<8x128xi1>
    %37 = arith.select %36, %34, %15 : vector<8x128xi1>, vector<8x128xf32>
    %38 = vector.extract_strided_slice %8 {offsets = [0, 0], sizes = [1, 128], strides = [1, 1]} : vector<8x128xi32> to vector<1x128xi32>
    %39 = vector.broadcast %38 : vector<1x128xi32> to vector<8x128xi32>
    %40 = arith.cmpi eq, %10, %39 : vector<8x128xi32>
    %41 = vector.broadcast %20 : vector<1x128xi1> to vector<8x128xi1>
    %42 = arith.andi %40, %41 : vector<8x128xi1>
    %cst_17 = arith.constant 0.000000e+00 : f32
    %43 = vector.broadcast %cst_17 : f32 to vector<8x128xf32>
    %44 = arith.select %42, %17, %43 : vector<8x128xi1>, vector<8x128xf32>
    %45 = arith.addf %16, %44 : vector<8x128xf32>
    %46 = vector.extract_strided_slice %5 {offsets = [0, 128], sizes = [8, 128], strides = [1, 1]} : vector<8x1024xf32> to vector<8x128xf32>
    %47 = vector.extract_strided_slice %9 {offsets = [1, 0], sizes = [1, 128], strides = [1, 1]} : vector<8x128xf32> to vector<1x128xf32>
    %cst_18 = arith.constant 0.000000e+00 : f32
    %48 = vector.broadcast %cst_18 : f32 to vector<1x128xf32>
    %49 = arith.cmpf ogt, %47, %48 : vector<1x128xf32>
    %50 = vector.shape_cast %37 : vector<8x128xf32> to vector<1x8x128xf32>
    %51 = vector.broadcast %50 : vector<1x8x128xf32> to vector<8x8x128xf32>
    %52 = vector.broadcast %7 : vector<8x8x1xf32> to vector<8x8x128xf32>
    %53 = arith.addf %51, %52 : vector<8x8x128xf32>
    %cst_19 = arith.constant dense<0xFF800000> : vector<8x128xf32>
    %54 = vector.multi_reduction <maximumf>, %53, %cst_19 [1] : vector<8x8x128xf32> to vector<8x128xf32>
    %55 = vector.shape_cast %54 : vector<8x128xf32> to vector<8x1x128xf32>
    %56 = vector.broadcast %55 : vector<8x1x128xf32> to vector<8x8x128xf32>
    %57 = arith.subf %53, %56 : vector<8x8x128xf32>
    %58 = math.exp %57 : vector<8x8x128xf32>
    %cst_20 = arith.constant dense<0.000000e+00> : vector<8x128xf32>
    %59 = vector.multi_reduction <add>, %58, %cst_20 [1] : vector<8x8x128xf32> to vector<8x128xf32>
    %60 = math.log %59 : vector<8x128xf32>
    %61 = vector.shape_cast %55 : vector<8x1x128xf32> to vector<8x128xf32>
    %62 = arith.addf %60, %61 : vector<8x128xf32>
    %63 = arith.addf %62, %46 : vector<8x128xf32>
    %64 = vector.shape_cast %49 : vector<1x128xi1> to vector<1x128xi1>
    %65 = vector.broadcast %64 : vector<1x128xi1> to vector<8x128xi1>
    %66 = arith.select %65, %63, %37 : vector<8x128xi1>, vector<8x128xf32>
    %67 = vector.extract_strided_slice %8 {offsets = [1, 0], sizes = [1, 128], strides = [1, 1]} : vector<8x128xi32> to vector<1x128xi32>
    %68 = vector.broadcast %67 : vector<1x128xi32> to vector<8x128xi32>
    %69 = arith.cmpi eq, %10, %68 : vector<8x128xi32>
    %70 = vector.broadcast %49 : vector<1x128xi1> to vector<8x128xi1>
    %71 = arith.andi %69, %70 : vector<8x128xi1>
    %cst_21 = arith.constant 0.000000e+00 : f32
    %72 = vector.broadcast %cst_21 : f32 to vector<8x128xf32>
    %73 = arith.select %71, %46, %72 : vector<8x128xi1>, vector<8x128xf32>
    %74 = arith.addf %45, %73 : vector<8x128xf32>
    %75 = vector.extract_strided_slice %5 {offsets = [0, 256], sizes = [8, 128], strides = [1, 1]} : vector<8x1024xf32> to vector<8x128xf32>
    %76 = vector.extract_strided_slice %9 {offsets = [2, 0], sizes = [1, 128], strides = [1, 1]} : vector<8x128xf32> to vector<1x128xf32>
    %cst_22 = arith.constant 0.000000e+00 : f32
    %77 = vector.broadcast %cst_22 : f32 to vector<1x128xf32>
    %78 = arith.cmpf ogt, %76, %77 : vector<1x128xf32>
    %79 = vector.shape_cast %66 : vector<8x128xf32> to vector<1x8x128xf32>
    %80 = vector.broadcast %79 : vector<1x8x128xf32> to vector<8x8x128xf32>
    %81 = vector.broadcast %7 : vector<8x8x1xf32> to vector<8x8x128xf32>
    %82 = arith.addf %80, %81 : vector<8x8x128xf32>
    %cst_23 = arith.constant dense<0xFF800000> : vector<8x128xf32>
    %83 = vector.multi_reduction <maximumf>, %82, %cst_23 [1] : vector<8x8x128xf32> to vector<8x128xf32>
    %84 = vector.shape_cast %83 : vector<8x128xf32> to vector<8x1x128xf32>
    %85 = vector.broadcast %84 : vector<8x1x128xf32> to vector<8x8x128xf32>
    %86 = arith.subf %82, %85 : vector<8x8x128xf32>
    %87 = math.exp %86 : vector<8x8x128xf32>
    %cst_24 = arith.constant dense<0.000000e+00> : vector<8x128xf32>
    %88 = vector.multi_reduction <add>, %87, %cst_24 [1] : vector<8x8x128xf32> to vector<8x128xf32>
    %89 = math.log %88 : vector<8x128xf32>
    %90 = vector.shape_cast %84 : vector<8x1x128xf32> to vector<8x128xf32>
    %91 = arith.addf %89, %90 : vector<8x128xf32>
    %92 = arith.addf %91, %75 : vector<8x128xf32>
    %93 = vector.shape_cast %78 : vector<1x128xi1> to vector<1x128xi1>
    %94 = vector.broadcast %93 : vector<1x128xi1> to vector<8x128xi1>
    %95 = arith.select %94, %92, %66 : vector<8x128xi1>, vector<8x128xf32>
    %96 = vector.extract_strided_slice %8 {offsets = [2, 0], sizes = [1, 128], strides = [1, 1]} : vector<8x128xi32> to vector<1x128xi32>
    %97 = vector.broadcast %96 : vector<1x128xi32> to vector<8x128xi32>
    %98 = arith.cmpi eq, %10, %97 : vector<8x128xi32>
    %99 = vector.broadcast %78 : vector<1x128xi1> to vector<8x128xi1>
    %100 = arith.andi %98, %99 : vector<8x128xi1>
    %cst_25 = arith.constant 0.000000e+00 : f32
    %101 = vector.broadcast %cst_25 : f32 to vector<8x128xf32>
    %102 = arith.select %100, %75, %101 : vector<8x128xi1>, vector<8x128xf32>
    %103 = arith.addf %74, %102 : vector<8x128xf32>
    %104 = vector.extract_strided_slice %5 {offsets = [0, 384], sizes = [8, 128], strides = [1, 1]} : vector<8x1024xf32> to vector<8x128xf32>
    %105 = vector.extract_strided_slice %9 {offsets = [3, 0], sizes = [1, 128], strides = [1, 1]} : vector<8x128xf32> to vector<1x128xf32>
    %cst_26 = arith.constant 0.000000e+00 : f32
    %106 = vector.broadcast %cst_26 : f32 to vector<1x128xf32>
    %107 = arith.cmpf ogt, %105, %106 : vector<1x128xf32>
    %108 = vector.shape_cast %95 : vector<8x128xf32> to vector<1x8x128xf32>
    %109 = vector.broadcast %108 : vector<1x8x128xf32> to vector<8x8x128xf32>
    %110 = vector.broadcast %7 : vector<8x8x1xf32> to vector<8x8x128xf32>
    %111 = arith.addf %109, %110 : vector<8x8x128xf32>
    %cst_27 = arith.constant dense<0xFF800000> : vector<8x128xf32>
    %112 = vector.multi_reduction <maximumf>, %111, %cst_27 [1] : vector<8x8x128xf32> to vector<8x128xf32>
    %113 = vector.shape_cast %112 : vector<8x128xf32> to vector<8x1x128xf32>
    %114 = vector.broadcast %113 : vector<8x1x128xf32> to vector<8x8x128xf32>
    %115 = arith.subf %111, %114 : vector<8x8x128xf32>
    %116 = math.exp %115 : vector<8x8x128xf32>
    %cst_28 = arith.constant dense<0.000000e+00> : vector<8x128xf32>
    %117 = vector.multi_reduction <add>, %116, %cst_28 [1] : vector<8x8x128xf32> to vector<8x128xf32>
    %118 = math.log %117 : vector<8x128xf32>
    %119 = vector.shape_cast %113 : vector<8x1x128xf32> to vector<8x128xf32>
    %120 = arith.addf %118, %119 : vector<8x128xf32>
    %121 = arith.addf %120, %104 : vector<8x128xf32>
    %122 = vector.shape_cast %107 : vector<1x128xi1> to vector<1x128xi1>
    %123 = vector.broadcast %122 : vector<1x128xi1> to vector<8x128xi1>
    %124 = arith.select %123, %121, %95 : vector<8x128xi1>, vector<8x128xf32>
    %125 = vector.extract_strided_slice %8 {offsets = [3, 0], sizes = [1, 128], strides = [1, 1]} : vector<8x128xi32> to vector<1x128xi32>
    %126 = vector.broadcast %125 : vector<1x128xi32> to vector<8x128xi32>
    %127 = arith.cmpi eq, %10, %126 : vector<8x128xi32>
    %128 = vector.broadcast %107 : vector<1x128xi1> to vector<8x128xi1>
    %129 = arith.andi %127, %128 : vector<8x128xi1>
    %cst_29 = arith.constant 0.000000e+00 : f32
    %130 = vector.broadcast %cst_29 : f32 to vector<8x128xf32>
    %131 = arith.select %129, %104, %130 : vector<8x128xi1>, vector<8x128xf32>
    %132 = arith.addf %103, %131 : vector<8x128xf32>
    %133 = vector.extract_strided_slice %5 {offsets = [0, 512], sizes = [8, 128], strides = [1, 1]} : vector<8x1024xf32> to vector<8x128xf32>
    %134 = vector.extract_strided_slice %9 {offsets = [4, 0], sizes = [1, 128], strides = [1, 1]} : vector<8x128xf32> to vector<1x128xf32>
    %cst_30 = arith.constant 0.000000e+00 : f32
    %135 = vector.broadcast %cst_30 : f32 to vector<1x128xf32>
    %136 = arith.cmpf ogt, %134, %135 : vector<1x128xf32>
    %137 = vector.shape_cast %124 : vector<8x128xf32> to vector<1x8x128xf32>
    %138 = vector.broadcast %137 : vector<1x8x128xf32> to vector<8x8x128xf32>
    %139 = vector.broadcast %7 : vector<8x8x1xf32> to vector<8x8x128xf32>
    %140 = arith.addf %138, %139 : vector<8x8x128xf32>
    %cst_31 = arith.constant dense<0xFF800000> : vector<8x128xf32>
    %141 = vector.multi_reduction <maximumf>, %140, %cst_31 [1] : vector<8x8x128xf32> to vector<8x128xf32>
    %142 = vector.shape_cast %141 : vector<8x128xf32> to vector<8x1x128xf32>
    %143 = vector.broadcast %142 : vector<8x1x128xf32> to vector<8x8x128xf32>
    %144 = arith.subf %140, %143 : vector<8x8x128xf32>
    %145 = math.exp %144 : vector<8x8x128xf32>
    %cst_32 = arith.constant dense<0.000000e+00> : vector<8x128xf32>
    %146 = vector.multi_reduction <add>, %145, %cst_32 [1] : vector<8x8x128xf32> to vector<8x128xf32>
    %147 = math.log %146 : vector<8x128xf32>
    %148 = vector.shape_cast %142 : vector<8x1x128xf32> to vector<8x128xf32>
    %149 = arith.addf %147, %148 : vector<8x128xf32>
    %150 = arith.addf %149, %133 : vector<8x128xf32>
    %151 = vector.shape_cast %136 : vector<1x128xi1> to vector<1x128xi1>
    %152 = vector.broadcast %151 : vector<1x128xi1> to vector<8x128xi1>
    %153 = arith.select %152, %150, %124 : vector<8x128xi1>, vector<8x128xf32>
    %154 = vector.extract_strided_slice %8 {offsets = [4, 0], sizes = [1, 128], strides = [1, 1]} : vector<8x128xi32> to vector<1x128xi32>
    %155 = vector.broadcast %154 : vector<1x128xi32> to vector<8x128xi32>
    %156 = arith.cmpi eq, %10, %155 : vector<8x128xi32>
    %157 = vector.broadcast %136 : vector<1x128xi1> to vector<8x128xi1>
    %158 = arith.andi %156, %157 : vector<8x128xi1>
    %cst_33 = arith.constant 0.000000e+00 : f32
    %159 = vector.broadcast %cst_33 : f32 to vector<8x128xf32>
    %160 = arith.select %158, %133, %159 : vector<8x128xi1>, vector<8x128xf32>
    %161 = arith.addf %132, %160 : vector<8x128xf32>
    %162 = vector.extract_strided_slice %5 {offsets = [0, 640], sizes = [8, 128], strides = [1, 1]} : vector<8x1024xf32> to vector<8x128xf32>
    %163 = vector.extract_strided_slice %9 {offsets = [5, 0], sizes = [1, 128], strides = [1, 1]} : vector<8x128xf32> to vector<1x128xf32>
    %cst_34 = arith.constant 0.000000e+00 : f32
    %164 = vector.broadcast %cst_34 : f32 to vector<1x128xf32>
    %165 = arith.cmpf ogt, %163, %164 : vector<1x128xf32>
    %166 = vector.shape_cast %153 : vector<8x128xf32> to vector<1x8x128xf32>
    %167 = vector.broadcast %166 : vector<1x8x128xf32> to vector<8x8x128xf32>
    %168 = vector.broadcast %7 : vector<8x8x1xf32> to vector<8x8x128xf32>
    %169 = arith.addf %167, %168 : vector<8x8x128xf32>
    %cst_35 = arith.constant dense<0xFF800000> : vector<8x128xf32>
    %170 = vector.multi_reduction <maximumf>, %169, %cst_35 [1] : vector<8x8x128xf32> to vector<8x128xf32>
    %171 = vector.shape_cast %170 : vector<8x128xf32> to vector<8x1x128xf32>
    %172 = vector.broadcast %171 : vector<8x1x128xf32> to vector<8x8x128xf32>
    %173 = arith.subf %169, %172 : vector<8x8x128xf32>
    %174 = math.exp %173 : vector<8x8x128xf32>
    %cst_36 = arith.constant dense<0.000000e+00> : vector<8x128xf32>
    %175 = vector.multi_reduction <add>, %174, %cst_36 [1] : vector<8x8x128xf32> to vector<8x128xf32>
    %176 = math.log %175 : vector<8x128xf32>
    %177 = vector.shape_cast %171 : vector<8x1x128xf32> to vector<8x128xf32>
    %178 = arith.addf %176, %177 : vector<8x128xf32>
    %179 = arith.addf %178, %162 : vector<8x128xf32>
    %180 = vector.shape_cast %165 : vector<1x128xi1> to vector<1x128xi1>
    %181 = vector.broadcast %180 : vector<1x128xi1> to vector<8x128xi1>
    %182 = arith.select %181, %179, %153 : vector<8x128xi1>, vector<8x128xf32>
    %183 = vector.extract_strided_slice %8 {offsets = [5, 0], sizes = [1, 128], strides = [1, 1]} : vector<8x128xi32> to vector<1x128xi32>
    %184 = vector.broadcast %183 : vector<1x128xi32> to vector<8x128xi32>
    %185 = arith.cmpi eq, %10, %184 : vector<8x128xi32>
    %186 = vector.broadcast %165 : vector<1x128xi1> to vector<8x128xi1>
    %187 = arith.andi %185, %186 : vector<8x128xi1>
    %cst_37 = arith.constant 0.000000e+00 : f32
    %188 = vector.broadcast %cst_37 : f32 to vector<8x128xf32>
    %189 = arith.select %187, %162, %188 : vector<8x128xi1>, vector<8x128xf32>
    %190 = arith.addf %161, %189 : vector<8x128xf32>
    %191 = vector.extract_strided_slice %5 {offsets = [0, 768], sizes = [8, 128], strides = [1, 1]} : vector<8x1024xf32> to vector<8x128xf32>
    %192 = vector.extract_strided_slice %9 {offsets = [6, 0], sizes = [1, 128], strides = [1, 1]} : vector<8x128xf32> to vector<1x128xf32>
    %cst_38 = arith.constant 0.000000e+00 : f32
    %193 = vector.broadcast %cst_38 : f32 to vector<1x128xf32>
    %194 = arith.cmpf ogt, %192, %193 : vector<1x128xf32>
    %195 = vector.shape_cast %182 : vector<8x128xf32> to vector<1x8x128xf32>
    %196 = vector.broadcast %195 : vector<1x8x128xf32> to vector<8x8x128xf32>
    %197 = vector.broadcast %7 : vector<8x8x1xf32> to vector<8x8x128xf32>
    %198 = arith.addf %196, %197 : vector<8x8x128xf32>
    %cst_39 = arith.constant dense<0xFF800000> : vector<8x128xf32>
    %199 = vector.multi_reduction <maximumf>, %198, %cst_39 [1] : vector<8x8x128xf32> to vector<8x128xf32>
    %200 = vector.shape_cast %199 : vector<8x128xf32> to vector<8x1x128xf32>
    %201 = vector.broadcast %200 : vector<8x1x128xf32> to vector<8x8x128xf32>
    %202 = arith.subf %198, %201 : vector<8x8x128xf32>
    %203 = math.exp %202 : vector<8x8x128xf32>
    %cst_40 = arith.constant dense<0.000000e+00> : vector<8x128xf32>
    %204 = vector.multi_reduction <add>, %203, %cst_40 [1] : vector<8x8x128xf32> to vector<8x128xf32>
    %205 = math.log %204 : vector<8x128xf32>
    %206 = vector.shape_cast %200 : vector<8x1x128xf32> to vector<8x128xf32>
    %207 = arith.addf %205, %206 : vector<8x128xf32>
    %208 = arith.addf %207, %191 : vector<8x128xf32>
    %209 = vector.shape_cast %194 : vector<1x128xi1> to vector<1x128xi1>
    %210 = vector.broadcast %209 : vector<1x128xi1> to vector<8x128xi1>
    %211 = arith.select %210, %208, %182 : vector<8x128xi1>, vector<8x128xf32>
    %212 = vector.extract_strided_slice %8 {offsets = [6, 0], sizes = [1, 128], strides = [1, 1]} : vector<8x128xi32> to vector<1x128xi32>
    %213 = vector.broadcast %212 : vector<1x128xi32> to vector<8x128xi32>
    %214 = arith.cmpi eq, %10, %213 : vector<8x128xi32>
    %215 = vector.broadcast %194 : vector<1x128xi1> to vector<8x128xi1>
    %216 = arith.andi %214, %215 : vector<8x128xi1>
    %cst_41 = arith.constant 0.000000e+00 : f32
    %217 = vector.broadcast %cst_41 : f32 to vector<8x128xf32>
    %218 = arith.select %216, %191, %217 : vector<8x128xi1>, vector<8x128xf32>
    %219 = arith.addf %190, %218 : vector<8x128xf32>
    %220 = vector.extract_strided_slice %5 {offsets = [0, 896], sizes = [8, 128], strides = [1, 1]} : vector<8x1024xf32> to vector<8x128xf32>
    %221 = vector.extract_strided_slice %9 {offsets = [7, 0], sizes = [1, 128], strides = [1, 1]} : vector<8x128xf32> to vector<1x128xf32>
    %cst_42 = arith.constant 0.000000e+00 : f32
    %222 = vector.broadcast %cst_42 : f32 to vector<1x128xf32>
    %223 = arith.cmpf ogt, %221, %222 : vector<1x128xf32>
    %224 = vector.shape_cast %211 : vector<8x128xf32> to vector<1x8x128xf32>
    %225 = vector.broadcast %224 : vector<1x8x128xf32> to vector<8x8x128xf32>
    %226 = vector.broadcast %7 : vector<8x8x1xf32> to vector<8x8x128xf32>
    %227 = arith.addf %225, %226 : vector<8x8x128xf32>
    %cst_43 = arith.constant dense<0xFF800000> : vector<8x128xf32>
    %228 = vector.multi_reduction <maximumf>, %227, %cst_43 [1] : vector<8x8x128xf32> to vector<8x128xf32>
    %229 = vector.shape_cast %228 : vector<8x128xf32> to vector<8x1x128xf32>
    %230 = vector.broadcast %229 : vector<8x1x128xf32> to vector<8x8x128xf32>
    %231 = arith.subf %227, %230 : vector<8x8x128xf32>
    %232 = math.exp %231 : vector<8x8x128xf32>
    %cst_44 = arith.constant dense<0.000000e+00> : vector<8x128xf32>
    %233 = vector.multi_reduction <add>, %232, %cst_44 [1] : vector<8x8x128xf32> to vector<8x128xf32>
    %234 = math.log %233 : vector<8x128xf32>
    %235 = vector.shape_cast %229 : vector<8x1x128xf32> to vector<8x128xf32>
    %236 = arith.addf %234, %235 : vector<8x128xf32>
    %237 = arith.addf %236, %220 : vector<8x128xf32>
    %238 = vector.shape_cast %223 : vector<1x128xi1> to vector<1x128xi1>
    %239 = vector.broadcast %238 : vector<1x128xi1> to vector<8x128xi1>
    %240 = arith.select %239, %237, %211 : vector<8x128xi1>, vector<8x128xf32>
    %241 = vector.extract_strided_slice %8 {offsets = [7, 0], sizes = [1, 128], strides = [1, 1]} : vector<8x128xi32> to vector<1x128xi32>
    %242 = vector.broadcast %241 : vector<1x128xi32> to vector<8x128xi32>
    %243 = arith.cmpi eq, %10, %242 : vector<8x128xi32>
    %244 = vector.broadcast %223 : vector<1x128xi1> to vector<8x128xi1>
    %245 = arith.andi %243, %244 : vector<8x128xi1>
    %cst_45 = arith.constant 0.000000e+00 : f32
    %246 = vector.broadcast %cst_45 : f32 to vector<8x128xf32>
    %247 = arith.select %245, %220, %246 : vector<8x128xi1>, vector<8x128xf32>
    %248 = arith.addf %219, %247 : vector<8x128xf32>
    %c0_46 = arith.constant 0 : index
    %c0_47 = arith.constant 0 : index
    %249 = vector.load %arg5[%c0_46, %c0_47] : memref<8x1xf32, #tpu.memory_space<vmem>>, vector<8x1xf32>
    %250 = vector.broadcast %249 : vector<8x1xf32> to vector<8x128xf32>
    %251 = arith.addf %240, %250 : vector<8x128xf32>
    %cst_48 = arith.constant dense<0xFF800000> : vector<128xf32>
    %252 = vector.multi_reduction <maximumf>, %251, %cst_48 [0] : vector<8x128xf32> to vector<128xf32>
    %253 = vector.shape_cast %252 : vector<128xf32> to vector<1x128xf32>
    %254 = vector.broadcast %253 : vector<1x128xf32> to vector<8x128xf32>
    %255 = arith.subf %251, %254 : vector<8x128xf32>
    %256 = math.exp %255 : vector<8x128xf32>
    %cst_49 = arith.constant dense<0.000000e+00> : vector<128xf32>
    %257 = vector.multi_reduction <add>, %256, %cst_49 [0] : vector<8x128xf32> to vector<128xf32>
    %258 = vector.shape_cast %257 : vector<128xf32> to vector<1x128xf32>
    %259 = math.log %258 : vector<1x128xf32>
    %260 = arith.addf %259, %253 : vector<1x128xf32>
    %cst_50 = arith.constant dense<0.000000e+00> : vector<128xf32>
    %261 = vector.multi_reduction <add>, %248, %cst_50 [0] : vector<8x128xf32> to vector<128xf32>
    %262 = vector.shape_cast %261 : vector<128xf32> to vector<1x128xf32>
    %263 = arith.subf %260, %262 : vector<1x128xf32>
    %c0_51 = arith.constant 0 : index
    %c0_52 = arith.constant 0 : index
    %264 = vector.load %arg8[%c0_51, %c0_52] : memref<1x128xf32, #tpu.memory_space<vmem>>, vector<1x128xf32>
    tpu.vector_store %arg8[%c0_51, %c0_52], %263 {strides = array<i32>} : memref<1x128xf32, #tpu.memory_space<vmem>>, vector<1x128xf32>,
    return
  }
  func.func @transform_0(%arg0: i32) -> (i32, i32) {
    %c0_i32 = arith.constant 0 : i32
    %c0_i32_0 = arith.constant 0 : i32
    return %c0_i32, %arg0 : i32, i32
  }
  func.func @transform_1(%arg0: i32) -> (i32, i32) {
    %c0_i32 = arith.constant 0 : i32
    %c0_i32_0 = arith.constant 0 : i32
    %c0_i32_1 = arith.constant 0 : i32
    return %c0_i32, %c0_i32_0 : i32, i32
  }
  func.func @transform_2(%arg0: i32) -> (i32, i32) {
    %c0_i32 = arith.constant 0 : i32
    %c0_i32_0 = arith.constant 0 : i32
    %c0_i32_1 = arith.constant 0 : i32
    return %c0_i32, %c0_i32_0 : i32, i32
  }
  func.func @transform_3(%arg0: i32) -> (i32, i32) {
    %c0_i32 = arith.constant 0 : i32
    %c0_i32_0 = arith.constant 0 : i32
    %c0_i32_1 = arith.constant 0 : i32
    return %c0_i32, %c0_i32_0 : i32, i32
  }
  func.func @transform_4(%arg0: i32) -> (i32, i32) {
    %c0_i32 = arith.constant 0 : i32
    %c0_i32_0 = arith.constant 0 : i32
    %c0_i32_1 = arith.constant 0 : i32
    return %c0_i32, %c0_i32_0 : i32, i32
  }
  func.func @transform_5(%arg0: i32) -> (i32, i32) {
    %c0_i32 = arith.constant 0 : i32
    %c0_i32_0 = arith.constant 0 : i32
    return %c0_i32, %arg0 : i32, i32
  }
  func.func @transform_6(%arg0: i32) -> (i32, i32) {
    %c0_i32 = arith.constant 0 : i32
    %c0_i32_0 = arith.constant 0 : i32
    return %c0_i32, %arg0 : i32, i32
  }
  func.func @transform_7(%arg0: i32) -> (i32, i32) {
    %c0_i32 = arith.constant 0 : i32
    %c0_i32_0 = arith.constant 0 : i32
    return %c0_i32, %arg0 : i32, i32
  }
}

</mosaic_0001>

<bundles_post_ra>
// kernel: crf_decoder_forward.1
= control target key start
LH: loop header
LB: loop body
LE: loop exit
PB: predicated region body
PF: predicated region fallthrough
CT: control target
= control target key end

     0   :  { %v231_v0 = vlaneseq  ;;  %vm65_vm0 = vcmask 261120   ;;  %v2269_v45 = vmov 0   ;;  %v2270_v46 = vmov -1000.0   ;;  %s3497_s0 = inlined_call_operand.vmem [shape: f32[32,1024], index: 0, kind: input, shape index: {}]   ;;  %s3498_s3 = inlined_call_operand.vmem [shape: f32[8,8], index: 3, kind: input, shape index: {}]   ;;  %s3499_s1 = inlined_call_operand.vmem [shape: f32[8,32], index: 1, kind: input, shape index: {}]   ;;  %s3500_s2 = inlined_call_operand.vmem [shape: f32[8,1], index: 2, kind: input, shape index: {}]   ;;  %s3501_s6 = inlined_call_operand.vmem [shape: f32[8,128], index: 6, kind: input, shape index: {}]   ;;  %s3502_s4 = inlined_call_operand.vmem [shape: f32[8,1], index: 4, kind: input, shape index: {}]   ;;  %s3503_s5 = inlined_call_operand.vmem [shape: s32[8,128], index: 5, kind: input, shape index: {}]   ;;  %s3504_s7 = inlined_call_operand.vmem [shape: f32[1,128], index: 7, kind: output, shape index: {}]  }
   0x1   :  { %v51_v1 = vld [vmem:[%s3497_s0 + $0xc0] sm:$0xff]  ;;  %v53_v4 = vld [vmem:[%s3497_s0 + $0xd0] sm:$0xff]  ;;  %v54_v6 = vld [vmem:[%s3497_s0 + $0xd8] sm:$0xff] }
   0x2   :  { %v2314_v2 = vshrl.u32 %v231_v0, 7  ;;  %81 = vmatpush.msra.mxu0 %v51_v1  ;;  %v43_v3 = vld [vmem:[%s3497_s0 + $0x80] sm:$0xff]  ;;  %v52_v7 = vld [vmem:[%s3497_s0 + $0xc8] sm:$0xff]  ;;  %v45_v9 = vld [vmem:[%s3497_s0 + $0x90] sm:$0xff]  ;;  %121 = vmatpush.msra.mxu2 %v53_v4 }
   0x3   :  { %v35_v5 = vld [vmem:[%s3497_s0 + $0x40] sm:$0xff]  ;;  %v46_v10 = vld [vmem:[%s3497_s0 + $0x98] sm:$0xff]  ;;  %141 = vmatpush.msra.mxu3 %v54_v6  ;;  %v44_v12 = vld [vmem:[%s3497_s0 + $0x88] sm:$0xff]  ;;  %101 = vmatpush.msra.mxu1 %v52_v7 }
   0x4   :  { %2006 = vset.pattern.permute.xlu2 %v2314_v2  ;;  %2005 = vset.pattern.permute.xlu1 %v2314_v2  ;;  %v2337_v8 = vld [vmem:[%s3498_s3] sm:$0xff]  ;;  %v37_v14 = vld [vmem:[%s3497_s0 + $0x50] sm:$0xff]  ;;  %v38_v17 = vld [vmem:[%s3497_s0 + $0x58] sm:$0xff]  ;;  %vm290_vm1 = vcmp.eq.s32.totalorder %v2314_v2, 6 }
   0x5   :  { %2004 = vset.pattern.permute.xlu0 %v2314_v2  ;;  %82 = vmatpush.msra.mxu0 %v43_v3  ;;  %v27_v11 = vld [vmem:[%s3497_s0] sm:$0xff]  ;;  %v258_v15 = vperm.slane %v2337_v8, 4  ;;  %v230_v16 = vperm.slane %v2337_v8, 0  ;;  %v36_v18 = vld [vmem:[%s3497_s0 + $0x48] sm:$0xff]  ;;  %v237_v19 = vperm.slane %v2337_v8, 1  ;;  %v29_v20 = vld [vmem:[%s3497_s0 + $0x10] sm:$0xff] }
   0x6   :  { %v2354_v13 = vld [vmem:[%s3499_s1] sm:$0xff]  ;;  %122 = vmatpush.msra.mxu2 %v45_v9  ;;  %142 = vmatpush.msra.mxu3 %v46_v10  ;;  %v30_v21 = vld [vmem:[%s3497_s0 + $0x18] sm:$0xff]  ;;  %v57_v22 = vld [vmem:[%s3497_s0 + $0xf0] sm:$0xff]  ;;  %v265_v28 = vperm.slane %v2337_v8, 5  ;;  %v251_v29 = vperm.slane %v2337_v8, 3  ;;  %v244_v32 = vperm.slane %v2337_v8, 2 }
   0x7   :  { %83 = vmatpush.msra.mxu0 %v35_v5  ;;  %102 = vmatpush.msra.mxu1 %v44_v12  ;;  %v28_v23 = vld [vmem:[%s3497_s0 + $0x8] sm:$0xff]  ;;  %v55_v24 = vld [vmem:[%s3497_s0 + $0xe0] sm:$0xff]  ;;  %v49_v25 = vld [vmem:[%s3497_s0 + $0xb0] sm:$0xff]  ;;  %v279_v41 = vperm.slane %v2337_v8, 7  ;;  %v272_v43 = vperm.slane %v2337_v8, 6  ;;  %v2452_v47 = vsel %vm290_vm1, 0.0, %v2270_v46 }
   0x8   :  { %123 = vmatpush.msra.mxu2 %v37_v14  ;;  %143 = vmatpush.msra.mxu3 %v38_v17  ;;  %v58_v26 = vld [vmem:[%s3497_s0 + $0xf8] sm:$0xff]  ;;  %v47_v27 = vld [vmem:[%s3497_s0 + $0xa0] sm:$0xff]  ;;  %v56_v30 = vld [vmem:[%s3497_s0 + $0xe8] sm:$0xff] }
   0x9   :  { %84 = vmatpush.msra.mxu0 %v27_v11  ;;  %103 = vmatpush.msra.mxu1 %v36_v18  ;;  %v41_v31 = vld [vmem:[%s3497_s0 + $0x70] sm:$0xff]  ;;  %v50_v33 = vld [vmem:[%s3497_s0 + $0xb8] sm:$0xff]  ;;  %v39_v34 = vld [vmem:[%s3497_s0 + $0x60] sm:$0xff] }
   0xa   :  { %1994 = vmatmul.msk.f32.vlgmr.msra.gmra.mxu0 %vm65_vm0, %v2354_v13  ;;  %124 = vmatpush.msra.mxu2 %v29_v20  ;;  %v48_v35 = vld [vmem:[%s3497_s0 + $0xa8] sm:$0xff]  ;;  %v33_v36 = vld [vmem:[%s3497_s0 + $0x30] sm:$0xff]  ;;  %v42_v37 = vld [vmem:[%s3497_s0 + $0x78] sm:$0xff] }
   0xb   :  { %1996 = vmatmul.msk.f32.vlgmr.msra.gmra.mxu2 %vm65_vm0, %v2354_v13  ;;  %144 = vmatpush.msra.mxu3 %v30_v21  ;;  %v31_v38 = vld [vmem:[%s3497_s0 + $0x20] sm:$0xff]  ;;  %v40_v39 = vld [vmem:[%s3497_s0 + $0x68] sm:$0xff]  ;;  %v34_v40 = vld [vmem:[%s3497_s0 + $0x38] sm:$0xff] }
   0xc   :  { %263 = vperm.xlu2 %2006, %v258_v15   ;;  %235 = vperm.xlu1 %2005, %v230_v16   ;;  %v32_v42 = vld [vmem:[%s3497_s0 + $0x28] sm:$0xff]  ;;  %v59_v44 = vld [vmem:[%s3500_s2] sm:$0xff] }
   0xd   :  { %242 = vperm.xlu0 %2004, %v237_v19   ;;  %201 = vmatpush.msrb.mxu2 %v57_v22 }
   0xe   :  { %1997 = vmatmul.msk.f32.vlgmr.msra.gmra.mxu3 %vm65_vm0, %v2354_v13  ;;  %104 = vmatpush.msra.mxu1 %v28_v23 }
   0xf   :  { %161 = vmatpush.msrb.mxu0 %v55_v24  ;;  %202 = vmatpush.msrb.mxu2 %v49_v25 }
  0x10   :  { %221 = vmatpush.msrb.mxu3 %v58_v26  ;;  %1995 = vmatmul.msk.f32.vlgmr.msra.gmra.mxu1 %vm65_vm0, %v2354_v13 }
  0x11   :  { %162 = vmatpush.msrb.mxu0 %v47_v27  ;;  %181 = vmatpush.msrb.mxu1 %v56_v30 }
  0x12   :  { %203 = vmatpush.msrb.mxu2 %v41_v31  ;;  %222 = vmatpush.msrb.mxu3 %v50_v33 }
  0x13   :  { %163 = vmatpush.msrb.mxu0 %v39_v34  ;;  %182 = vmatpush.msrb.mxu1 %v48_v35 }
  0x14   :  { %270 = vperm.xlu2 %2006, %v265_v28   ;;  %256 = vperm.xlu1 %2005, %v251_v29  }
  0x15   :  { %249 = vperm.xlu0 %2004, %v244_v32   ;;  %204 = vmatpush.msrb.mxu2 %v33_v36 }
  0x16   :  { %223 = vmatpush.msrb.mxu3 %v42_v37  ;;  %2000 = vmatmul.msk.f32.vlgmr.msrb.gmra.mxu2 %vm65_vm0, %v2354_v13 }
  0x17   :  { %164 = vmatpush.msrb.mxu0 %v31_v38  ;;  %183 = vmatpush.msrb.mxu1 %v40_v39 }
  0x18   :  { %224 = vmatpush.msrb.mxu3 %v34_v40  ;;  %1998 = vmatmul.msk.f32.vlgmr.msrb.gmra.mxu0 %vm65_vm0, %v2354_v13 }
  0x19   :  { %2001 = vmatmul.msk.f32.vlgmr.msrb.gmra.mxu3 %vm65_vm0, %v2354_v13  ;;  %184 = vmatpush.msrb.mxu1 %v32_v42 }
  0x1a   :  { %1999 = vmatmul.msk.f32.vlgmr.msrb.gmra.mxu1 %vm65_vm0, %v2354_v13 }
  0x1c   :  { %284 = vperm.xlu1 %2005, %v279_v41   ;;  %2007 = vset.pattern.permute.xlu2 %v2269_v45 }
  0x1d   :  { %277 = vperm.xlu0 %2004, %v272_v43   ;;  %62 = vperm.xlu2 %2007, %v59_v44  }
  0x25   :  { %2008 = vset.pattern.permute.xlu0 %v2269_v45 }
  0x66   :  { %v2454_v48 = vpop.permute.xlu2 %263 }
  0x67   :  { %v297_v49 = vadd.f32 %v2452_v47, %v2454_v48 }
  0x69   :  { %v325_v50 = vrot.slane %v297_v49, 4 }
  0x6b   :  { %v326_v51 = vmax.f32 %v297_v49, %v325_v50 }
  0x6d   :  { %v327_v52 = vrot.slane %v326_v51, 2 }
  0x6e   :  { %v2458_v53 = vpop.permute.xlu2 %270 }
  0x6f   :  { %v328_v54 = vmax.f32 %v326_v51, %v327_v52  ;;  %v298_v55 = vadd.f32 %v2452_v47, %v2458_v53 }
  0x71   :  { %v329_v56 = vrot.slane %v328_v54, 1  ;;  %v331_v57 = vrot.slane %v298_v55, 4 }
  0x73   :  { %v2462_v58 = vmax.f32 %v328_v54, %v329_v56  ;;  %v332_v59 = vmax.f32 %v298_v55, %v331_v57 }
  0x75   :  { %v333_v60 = vrot.slane %v332_v59, 2  ;;  %v353_v61 = vsub.f32 %v297_v49, %v2462_v58 }
  0x77   :  { %v334_v62 = vmax.f32 %v332_v59, %v333_v60  ;;  %v365_v0 = vmul.f32 1.442695, %v353_v61 }
  0x79   :  { %v335_v63 = vrot.slane %v334_v62, 1  ;;  %2009 = vpow2.f32 %v365_v0 }
  0x7b   :  { %v2465_v1 = vmax.f32 %v334_v62, %v335_v63 }
  0x7d   :  { %v354_v3 = vsub.f32 %v298_v55, %v2465_v1 }
  0x7e   :  { %v2468_v4 = vpop.permute.xlu1 %235 }
  0x7f   :  { %v367_v5 = vmul.f32 1.442695, %v354_v3  ;;  %v2470_v6 = vpop.permute.xlu0 %242  ;;  %v293_v7 = vadd.f32 %v2452_v47, %v2468_v4  ;;  %v2010_v13 = vpop.eup %2009 }
  0x80   :  { %v294_v8 = vadd.f32 %v2452_v47, %v2470_v6  ;;  %v397_v21 = vrot.slane %v2010_v13, 4 }
  0x81   :  { %v301_v9 = vrot.slane %v293_v7, 4  ;;  %2011 = vpow2.f32 %v367_v5 }
  0x82   :  { %v307_v10 = vrot.slane %v294_v8, 4  ;;  %v398_v31 = vadd.f32 %v2010_v13, %v397_v21 }
  0x83   :  { %v302_v11 = vmax.f32 %v293_v7, %v301_v9 }
  0x84   :  { %v308_v12 = vmax.f32 %v294_v8, %v307_v10  ;;  %v399_v44 = vrot.slane %v398_v31, 2 }
  0x85   :  { %v303_v14 = vrot.slane %v302_v11, 2 }
  0x86   :  { %v309_v15 = vrot.slane %v308_v12, 2  ;;  %v2476_v16 = vpop.permute.xlu1 %256  ;;  %v400_v60 = vadd.f32 %v399_v44, %v398_v31 }
  0x87   :  { %v304_v17 = vmax.f32 %v302_v11, %v303_v14  ;;  %v2478_v18 = vpop.permute.xlu0 %249  ;;  %v296_v19 = vadd.f32 %v2452_v47, %v2476_v16  ;;  %v2012_v20 = vpop.eup %2011 }
  0x88   :  { %v310_v22 = vmax.f32 %v308_v12, %v309_v15  ;;  %v295_v23 = vadd.f32 %v2452_v47, %v2478_v18  ;;  %v403_v28 = vrot.slane %v2012_v20, 4  ;;  %v401_v12 = vrot.slane %v400_v60, 1 }
  0x89   :  { %v305_v24 = vrot.slane %v304_v17, 1  ;;  %v319_v25 = vrot.slane %v296_v19, 4 }
  0x8a   :  { %v311_v26 = vrot.slane %v310_v22, 1  ;;  %v313_v27 = vrot.slane %v295_v23, 4  ;;  %v404_v39 = vadd.f32 %v2012_v20, %v403_v28 }
  0x8b   :  { %v2484_v29 = vmax.f32 %v304_v17, %v305_v24  ;;  %v320_v30 = vmax.f32 %v296_v19, %v319_v25 }
  0x8c   :  { %v2486_v32 = vmax.f32 %v310_v22, %v311_v26  ;;  %v314_v33 = vmax.f32 %v295_v23, %v313_v27  ;;  %v405_v56 = vrot.slane %v404_v39, 2  ;;  %v402_v26 = vadd.f32 %v401_v12, %v400_v60 }
  0x8d   :  { %v349_v34 = vsub.f32 %v293_v7, %v2484_v29  ;;  %v321_v35 = vrot.slane %v320_v30, 2 }
  0x8e   :  { %v350_v36 = vsub.f32 %v294_v8, %v2486_v32  ;;  %v315_v37 = vrot.slane %v314_v33, 2  ;;  %v2490_v38 = vpop.permute.xlu1 %284  ;;  %v406_v8 = vadd.f32 %v405_v56, %v404_v39 }
  0x8f   :  { %v357_v40 = vmul.f32 1.442695, %v349_v34  ;;  %v322_v41 = vmax.f32 %v320_v30, %v321_v35  ;;  %v2492_v42 = vpop.permute.xlu0 %277  ;;  %v300_v43 = vadd.f32 %v2452_v47, %v2490_v38  ;;  %v1957_v35 = vld [vmem:[%s3502_s4] sm:$0xff] }
  0x90   :  { %v359_v46 = vmul.f32 1.442695, %v350_v36  ;;  %v316_v49 = vmax.f32 %v314_v33, %v315_v37  ;;  %v299_v50 = vadd.f32 %v2452_v47, %v2492_v42  ;;  %1960 = vperm.xlu0 %2008, %v1957_v35  }
  0x91   :  { %2013 = vpow2.f32 %v357_v40  ;;  %v323_v51 = vrot.slane %v322_v41, 1  ;;  %v343_v52 = vrot.slane %v300_v43, 4 }
  0x92   :  { %2015 = vpow2.f32 %v359_v46  ;;  %v317_v54 = vrot.slane %v316_v49, 1  ;;  %v337_v55 = vrot.slane %v299_v50, 4 }
  0x93   :  { %v2498_v57 = vmax.f32 %v322_v41, %v323_v51  ;;  %v344_v59 = vmax.f32 %v300_v43, %v343_v52 }
  0x94   :  { %v2500_v61 = vmax.f32 %v316_v49, %v317_v54  ;;  %v338_v62 = vmax.f32 %v299_v50, %v337_v55 }
  0x95   :  { %v352_v63 = vsub.f32 %v296_v19, %v2498_v57  ;;  %v345_v0 = vrot.slane %v344_v59, 2  ;;  %v287_v19 = vld [vmem:[%s3501_s6] sm:$0xff] }
  0x96   :  { %v351_v3 = vsub.f32 %v295_v23, %v2500_v61  ;;  %v339_v5 = vrot.slane %v338_v62, 2  ;;  %v407_v23 = vrot.slane %v406_v8, 1  ;;  %vm292_vm2 = vcmp.gt.f32.partialorder %v287_v19, 0.0 }
  0x97   :  { %v2014_v7 = vpop.eup %2013  ;;  %v363_v9 = vmul.f32 1.442695, %v352_v63  ;;  %v346_v10 = vmax.f32 %v344_v59, %v345_v0 }
  0x98   :  { %v2016_v11 = vpop.eup %2015  ;;  %v373_v13 = vrot.slane %v2014_v7, 4  ;;  %v361_v14 = vmul.f32 1.442695, %v351_v3  ;;  %v340_v15 = vmax.f32 %v338_v62, %v339_v5  ;;  %v408_v37 = vadd.f32 %v407_v23, %v406_v8  ;;  %v126_v5 = vpop.f32.mrf.mxu2 }
  0x99   :  { %v379_v17 = vrot.slane %v2016_v11, 4  ;;  %2017 = vpow2.f32 %v363_v9  ;;  %v347_v20 = vrot.slane %v346_v10, 1 }
  0x9a   :  { %v374_v21 = vadd.f32 %v2014_v7, %v373_v13  ;;  %2019 = vpow2.f32 %v361_v14  ;;  %v341_v22 = vrot.slane %v340_v15, 1 }
  0x9b   :  { %v380_v24 = vadd.f32 %v2016_v11, %v379_v17  ;;  %v2507_v25 = vmax.f32 %v346_v10, %v347_v20  ;;  %2021 = vlog2.f32 %v402_v26  ;;  %v2528_v10 = vpop.permute.xlu2 %62  ;;  %v86_v11 = vpop.f32.mrf.mxu0 }
  0x9c   :  { %v375_v27 = vrot.slane %v374_v21, 2  ;;  %v2509_v28 = vmax.f32 %v340_v15, %v341_v22 }
  0x9d   :  { %v381_v30 = vrot.slane %v380_v24, 2  ;;  %v356_v31 = vsub.f32 %v300_v43, %v2507_v25  ;;  %v2517_v43 = vsel %vm292_vm2, 1, %v2269_v45  ;;  %v106_v45 = vpop.f32.mrf.mxu1 }
  0x9e   :  { %v376_v33 = vadd.f32 %v375_v27, %v374_v21  ;;  %v355_v34 = vsub.f32 %v299_v50, %v2509_v28  ;;  %v2522_v50 = vld [vmem:[%s3503_s5] sm:$0xff]  ;;  %v470_v60 = vperm.slane %v2517_v43, 0  ;;  %v684_v0 = vperm.slane %v2517_v43, 1 }
  0x9f   :  { %v2018_v36 = vpop.eup %2017  ;;  %v382_v39 = vadd.f32 %v381_v30, %v380_v24  ;;  %v371_v40 = vmul.f32 1.442695, %v356_v31  ;;  %v503_v63 = vperm.slane %v2522_v50, 0  ;;  %v710_v7 = vperm.slane %v2522_v50, 1 }
  0xa0   :  { %v2020_v41 = vpop.eup %2019  ;;  %v377_v44 = vrot.slane %v376_v33, 1  ;;  %v391_v46 = vrot.slane %v2018_v36, 4  ;;  %v369_v49 = vmul.f32 1.442695, %v355_v34  ;;  %v891_v14 = vperm.slane %v2517_v43, 2 }
  0xa1   :  { %v383_v51 = vrot.slane %v382_v39, 1  ;;  %v385_v52 = vrot.slane %v2020_v41, 4  ;;  %2023 = vpow2.f32 %v371_v40  ;;  %v2022_v8 = vpop.eup %2021  ;;  %v917_v15 = vperm.slane %v2522_v50, 2 }
  0xa2   :  { %v378_v54 = vadd.f32 %v377_v44, %v376_v33  ;;  %v392_v55 = vadd.f32 %v2018_v36, %v391_v46  ;;  %2025 = vpow2.f32 %v369_v49  ;;  %vm2532_vm3 = vcmp.eq.s32.totalorder %v470_v60, 1 }
  0xa3   :  { %2027 = vlog2.f32 %v408_v37  ;;  %v384_v56 = vadd.f32 %v383_v51, %v382_v39  ;;  %v386_v59 = vadd.f32 %v2020_v41, %v385_v52  ;;  %vm2537_vm4 = vcmp.eq.s32.totalorder %v2314_v2, %v503_v63  ;;  %v146_v52 = vpop.f32.mrf.mxu3 }
  0xa4   :  { %2029 = vlog2.f32 %v378_v54  ;;  %v393_v62 = vrot.slane %v392_v55, 2  ;;  %v1098_v23 = vperm.slane %v2517_v43, 3  ;;  %v1124_v24 = vperm.slane %v2522_v50, 3  ;;  %vm505_vm15 = vmand %vm2537_vm4, %vm2532_vm3 }
  0xa5   :  { %2031 = vlog2.f32 %v384_v56  ;;  %v387_v3 = vrot.slane %v386_v59, 2  ;;  %v2544_v31 = vadd.f32 %v86_v11, %v2528_v10  ;;  %vm2546_vm5 = vcmp.eq.s32.totalorder %v684_v0, 1 }
  0xa6   :  { %v394_v9 = vadd.f32 %v393_v62, %v392_v55  ;;  %vm2551_vm6 = vcmp.eq.s32.totalorder %v2314_v2, %v710_v7  ;;  %v430_v36 = vmul.f32 0.6931472, %v2022_v8  ;;  %v1305_v40 = vperm.slane %v2517_v43, 4 }
  0xa7   :  { %v2024_v12 = vpop.eup %2023  ;;  %v388_v13 = vadd.f32 %v387_v3, %v386_v59  ;;  %v446_v51 = vrot.slane %v2544_v31, 1  ;;  %vm2557_vm7 = vcmp.eq.s32.totalorder %v891_v14, 1  ;;  %vm2562_vm8 = vcmp.eq.s32.totalorder %v2314_v2, %v917_v15  ;;  %vm712_vm0 = vmand %vm2551_vm6, %vm2546_vm5 }
  0xa8   :  { %v2026_v17 = vpop.eup %2025  ;;  %v395_v20 = vrot.slane %v394_v9, 1  ;;  %v415_v21 = vrot.slane %v2024_v12, 4  ;;  %vm2566_vm9 = vcmp.eq.s32.totalorder %v1098_v23, 1  ;;  %vm2571_vm10 = vcmp.eq.s32.totalorder %v2314_v2, %v1124_v24  ;;  %vm919_vm4 = vmand %vm2562_vm8, %vm2557_vm7 }
  0xa9   :  { %v2028_v26 = vpop.eup %2027  ;;  %v389_v27 = vrot.slane %v388_v13, 1  ;;  %v409_v30 = vrot.slane %v2026_v17, 4  ;;  %v2576_v3 = vadd.f32 %v106_v45, %v2528_v10  ;;  %v441_v7 = vadd.f32 %v430_v36, %v2462_v58  ;;  %v206_v45 = vpop.f32.mrf.mxu2  ;;  %vm1126_vm1 = vmand %vm2571_vm10, %vm2566_vm9 }
  0xaa   :  { %v2030_v35 = vpop.eup %2029  ;;  %v396_v37 = vadd.f32 %v395_v20, %v394_v9  ;;  %v416_v39 = vadd.f32 %v2024_v12, %v415_v21  ;;  %v432_v63 = vmul.f32 0.6931472, %v2028_v26  ;;  %v2580_v9 = vadd.f32 %v126_v5, %v2528_v10  ;;  %v166_v12 = vpop.f32.mrf.mxu0 }
  0xab   :  { %v2032_v41 = vpop.eup %2031  ;;  %v422_v44 = vmul.f32 0.6931472, %v2030_v35  ;;  %v390_v46 = vadd.f32 %v389_v27, %v388_v13  ;;  %v410_v49 = vadd.f32 %v2026_v17, %v409_v30  ;;  %v2583_v11 = vadd.f32 %v146_v52, %v2528_v10  ;;  %v186_v13 = vpop.f32.mrf.mxu1 }
  0xac   :  { %v424_v56 = vmul.f32 0.6931472, %v2032_v41  ;;  %2033 = vlog2.f32 %v396_v37  ;;  %v417_v59 = vrot.slane %v416_v39, 2  ;;  %v447_v20 = vrot.slane %v2544_v31, 2 }
  0xad   :  { %2035 = vlog2.f32 %v390_v46  ;;  %v411_v0 = vrot.slane %v410_v49, 2  ;;  %v437_v15 = vadd.f32 %v422_v44, %v2484_v29  ;;  %v448_v58 = vrot.slane %v2544_v31, 3 }
  0xae   :  { %v418_v8 = vadd.f32 %v417_v59, %v416_v39  ;;  %v438_v14 = vadd.f32 %v424_v56, %v2486_v32  ;;  %vm2589_vm12 = vcmp.eq.s32.totalorder %v1305_v40, 1  ;;  %v3524_v5 = vmov 0 }
  0xaf   :  { %v412_v17 = vadd.f32 %v411_v0, %v410_v49  ;;  %v3525_v5 = vsel %vm2589_vm12, 4294967295, %v3524_v5  ;;  %v1331_v23 = vperm.slane %v2522_v50, 4  ;;  %v442_v24 = vadd.f32 %v432_v63, %v2465_v1 }
  0xb0   :  { %v419_v21 = vrot.slane %v418_v8, 1  ;;  %v2596_v32 = vadd.f32 %v166_v12, %v2528_v10  ;;  %v2599_v29 = vadd.f32 %v186_v13, %v2528_v10  ;;  %v2602_v35 = vadd.f32 %v206_v45, %v2528_v10 }
  0xb1   :  { %v413_v26 = vrot.slane %v412_v17, 1  ;;  %v461_v40 = vadd.f32 %v437_v15, %v2544_v31  ;;  %v462_v1 = vadd.f32 %v446_v51, %v438_v14  ;;  %v1512_v44 = vperm.slane %v2517_v43, 5 }
  0xb2   :  { %v2034_v27 = vpop.eup %2033  ;;  %v420_v30 = vadd.f32 %v419_v21, %v418_v8  ;;  %v1538_v46 = vperm.slane %v2522_v50, 5  ;;  %vm2617_vm2 = vcmp.eq.s32.totalorder %v2314_v2, %v1331_v23  ;;  %v1719_v19 = vperm.slane %v2517_v43, 6 }
  0xb3   :  { %v2036_v36 = vpop.eup %2035  ;;  %v428_v37 = vmul.f32 0.6931472, %v2034_v27  ;;  %v414_v39 = vadd.f32 %v413_v26, %v412_v17  ;;  %v1745_v56 = vperm.slane %v2522_v50, 6  ;;  %v506_v59 = vsel %vm505_vm15, %v2544_v31, 0.0  ;;  %vm1333_vm15 = vmand %vm2617_vm2, %vm2589_vm12 }
  0xb4   :  { %v426_v41 = vmul.f32 0.6931472, %v2036_v36  ;;  %2037 = vlog2.f32 %v420_v30  ;;  %v480_v63 = vrot.slane %v462_v1, 7  ;;  %v1926_v0 = vperm.slane %v2517_v43, 7 }
  0xb5   :  { %v440_v49 = vadd.f32 %v428_v37, %v2498_v57  ;;  %2039 = vlog2.f32 %v414_v39  ;;  %v449_v57 = vrot.slane %v2544_v31, 4  ;;  %v713_v8 = vsel %vm712_vm0, %v2576_v3, 0.0 }
  0xb6   :  { %v439_v52 = vadd.f32 %v426_v41, %v2500_v61  ;;  %vm2645_vm14 = vcmp.eq.s32.totalorder %v1512_v44, 1  ;;  %vm2650_vm13 = vcmp.eq.s32.totalorder %v2314_v2, %v1538_v46  ;;  %v714_v34 = vadd.f32 %v713_v8, %v506_v59 }
  0xb7   :  { %v464_v61 = vadd.f32 %v448_v58, %v440_v49  ;;  %vm2654_vm11 = vcmp.eq.s32.totalorder %v1719_v19, 1  ;;  %v450_v15 = vrot.slane %v2544_v31, 5  ;;  %v920_v45 = vsel %vm919_vm4, %v2580_v9, 0.0  ;;  %vm1540_vm8 = vmand %vm2650_vm13, %vm2645_vm14  ;;  %v226_v49 = vpop.f32.mrf.mxu3 }
  0xb8   :  { %v463_v13 = vadd.f32 %v447_v20, %v439_v52  ;;  %v465_v58 = vadd.f32 %v449_v57, %v441_v7  ;;  %v921_v26 = vadd.f32 %v920_v45, %v714_v34  ;;  %v1127_v20 = vsel %vm1126_vm1, %v2583_v11, 0.0 }
  0xb9   :  { %v486_v17 = vrot.slane %v464_v61, 5  ;;  %v1952_v36 = vperm.slane %v2522_v50, 7  ;;  %vm3534_vm6 = vcmask 1041409   ;;  %v1334_v7 = vsel %vm1333_vm15, %v2596_v32, 0.0 }
  0xba   :  { %v2038_v21 = vpop.eup %2037  ;;  %v483_v23 = vrot.slane %v463_v13, 6  ;;  %v482_v55 = vsel %vm3534_vm6, %v480_v63, %v461_v40  ;;  %vm2684_vm10 = vcmp.eq.s32.totalorder %v2314_v2, %v1745_v56  ;;  %vm3537_vm0 = vcmask 1042434  }
  0xbb   :  { %v2040_v27 = vpop.eup %2039  ;;  %v436_v30 = vmul.f32 0.6931472, %v2038_v21  ;;  %v1128_v39 = vadd.f32 %v1127_v20, %v921_v26  ;;  %v452_v1 = vrot.slane %v2544_v31, 7  ;;  %v466_v41 = vadd.f32 %v450_v15, %v442_v24  ;;  %vm3545_vm13 = vmand %vm2684_vm10, %vm2654_vm11 }
  0xbc   :  { %v434_v37 = vmul.f32 0.6931472, %v2040_v27  ;;  %v485_v50 = vsel %vm3537_vm0, %v483_v23, %v482_v55  ;;  %vm3538_vm1 = vcmask 1043459   ;;  %v451_v51 = vrot.slane %v2544_v31, 6 }
  0xbd   :  { %v444_v40 = vadd.f32 %v436_v30, %v2507_v25  ;;  %v488_v44 = vsel %vm3538_vm1, %v486_v17, %v485_v50  ;;  %v489_v19 = vrot.slane %v465_v58, 4  ;;  %v1335_v52 = vadd.f32 %v1334_v7, %v1128_v39 }
  0xbe   :  { %v443_v46 = vadd.f32 %v434_v37, %v2509_v28  ;;  %vm2698_vm4 = vcmp.eq.s32.totalorder %v1926_v0, 1  ;;  %v3539_v56 = vmov 0  ;;  %vm2703_vm15 = vcmp.eq.s32.totalorder %v2314_v2, %v1952_v36 }
  0xbf   :  { %v3540_v56 = vsel %vm2698_vm4, 4294967295, %v3539_v56  ;;  %v468_v28 = vadd.f32 %v452_v1, %v444_v40  ;;  %v1541_v31 = vsel %vm1540_vm8, %v2599_v29, 0.0  ;;  %vm493_vm6 = vcmask 1045509   ;;  %vm1954_vm12 = vmand %vm2703_vm15, %vm2698_vm4 }
  0xc0   :  { %3541 = vst [vmem:[#allocation2_spill] sm:$0xff] %v3540_v56  ;;  %v467_v24 = vadd.f32 %v451_v51, %v443_v46  ;;  %vm3544_vm0 = vcmask 1044484   ;;  %v1542_v59 = vadd.f32 %v1541_v31, %v1335_v52  ;;  %v2715_v63 = vadd.f32 %v226_v49, %v2528_v10 }
  0xc1   :  { %v491_v57 = vsel %vm3544_vm0, %v489_v19, %v488_v44  ;;  %vm496_vm1 = vcmask 1046534   ;;  %v492_v2 = vrot.slane %v466_v41, 3  ;;  %v498_v0 = vrot.slane %v468_v28, 1  ;;  %vm3550_vm10 = vmmov %vm3544_vm0 }
  0xc2   :  { %vm499_vm2 = vcmask 1047559   ;;  %v495_v61 = vrot.slane %v467_v24, 2  ;;  %v1748_v8 = vsel %vm3545_vm13, %v2602_v35, 0.0  ;;  %v1955_v15 = vsel %vm1954_vm12, %v2715_v63, 0.0  ;;  %vm3554_vm13 = vmmov %vm3550_vm10 }
  0xc3   :  { %v494_v10 = vsel %vm493_vm6, %v492_v2, %v491_v57  ;;  %v1749_v43 = vadd.f32 %v1748_v8, %v1542_v59  ;;  %vm3548_vm12 = vcmask 1042434   ;;  %vm3549_vm8 = vcmask 1043459  }
  0xc4   :  { %v497_v13 = vsel %vm496_vm1, %v495_v61, %v494_v10  ;;  %vm3552_vm15 = vmmov %vm3548_vm12 }
  0xc5   :  { %v500_v34 = vsel %vm499_vm2, %v498_v0, %v497_v13  ;;  %v2736_v45 = vadd.f32 %v1955_v15, %v1749_v43  ;;  %vm3553_vm0 = vmmov %vm3549_vm8 }
  0xc6   :  { %v2734_v17 = vsel %vm2532_vm3, %v500_v34, %v2452_v47  ;;  %vm3547_vm3 = vcmask 1041409  }
  0xc7   :  { %3546 = vst [vmem:[#allocation3_spill] sm:$0xff] %v2736_v45  ;;  %v2740_v21 = vadd.f32 %v2734_v17, %v2468_v4  ;;  %v2744_v58 = vadd.f32 %v2734_v17, %v2470_v6  ;;  %v2748_v23 = vadd.f32 %v2734_v17, %v2478_v18  ;;  %v2752_v26 = vadd.f32 %v2734_v17, %v2476_v16 }
  0xc8   :  { %v2756_v47 = vadd.f32 %v2734_v17, %v2454_v48  ;;  %v2760_v22 = vadd.f32 %v2734_v17, %v2458_v53  ;;  %v2764_v20 = vadd.f32 %v2734_v17, %v2492_v42  ;;  %v2768_v27 = vadd.f32 %v2734_v17, %v2490_v38 }
  0xc9   :  { %v516_v30 = vrot.slane %v2740_v21, 4  ;;  %v522_v36 = vrot.slane %v2744_v58, 4  ;;  %v528_v55 = vrot.slane %v2748_v23, 4  ;;  %v534_v7 = vrot.slane %v2752_v26, 4 }
  0xca   :  { %v540_v37 = vrot.slane %v2756_v47, 4  ;;  %v546_v62 = vrot.slane %v2760_v22, 4  ;;  %v552_v50 = vrot.slane %v2764_v20, 4  ;;  %v558_v39 = vrot.slane %v2768_v27, 4 }
  0xcb   :  { %v517_v40 = vmax.f32 %v2740_v21, %v516_v30  ;;  %v523_v1 = vmax.f32 %v2744_v58, %v522_v36  ;;  %v529_v41 = vmax.f32 %v2748_v23, %v528_v55  ;;  %v535_v44 = vmax.f32 %v2752_v26, %v534_v7 }
  0xcc   :  { %v541_v46 = vmax.f32 %v2756_v47, %v540_v37  ;;  %v547_v49 = vmax.f32 %v2760_v22, %v546_v62  ;;  %v553_v51 = vmax.f32 %v2764_v20, %v552_v50  ;;  %v559_v19 = vmax.f32 %v2768_v27, %v558_v39 }
  0xcd   :  { %v518_v52 = vrot.slane %v517_v40, 2  ;;  %v524_v25 = vrot.slane %v523_v1, 2  ;;  %v530_v28 = vrot.slane %v529_v41, 2  ;;  %v536_v31 = vrot.slane %v535_v44, 2 }
  0xce   :  { %v542_v24 = vrot.slane %v541_v46, 2  ;;  %v548_v57 = vrot.slane %v547_v49, 2  ;;  %v554_v59 = vrot.slane %v553_v51, 2  ;;  %v560_v2 = vrot.slane %v559_v19, 2 }
  0xcf   :  { %v519_v0 = vmax.f32 %v517_v40, %v518_v52  ;;  %v525_v61 = vmax.f32 %v523_v1, %v524_v25  ;;  %v531_v8 = vmax.f32 %v529_v41, %v530_v28  ;;  %v537_v10 = vmax.f32 %v535_v44, %v536_v31 }
  0xd0   :  { %v543_v43 = vmax.f32 %v541_v46, %v542_v24  ;;  %v549_v13 = vmax.f32 %v547_v49, %v548_v57  ;;  %v555_v34 = vmax.f32 %v553_v51, %v554_v59  ;;  %v561_v15 = vmax.f32 %v559_v19, %v560_v2 }
  0xd1   :  { %v520_v30 = vrot.slane %v519_v0, 1  ;;  %v526_v36 = vrot.slane %v525_v61, 1  ;;  %v532_v55 = vrot.slane %v531_v8, 1  ;;  %v538_v7 = vrot.slane %v537_v10, 1 }
  0xd2   :  { %v544_v37 = vrot.slane %v543_v43, 1  ;;  %v550_v62 = vrot.slane %v549_v13, 1  ;;  %v556_v50 = vrot.slane %v555_v34, 1  ;;  %v562_v39 = vrot.slane %v561_v15, 1 }
  0xd3   :  { %v2786_v45 = vmax.f32 %v519_v0, %v520_v30  ;;  %v2788_v56 = vmax.f32 %v525_v61, %v526_v36  ;;  %v2790_v40 = vmax.f32 %v531_v8, %v532_v55  ;;  %v2792_v1 = vmax.f32 %v537_v10, %v538_v7 }
  0xd4   :  { %v2794_v41 = vmax.f32 %v543_v43, %v544_v37  ;;  %v2796_v44 = vmax.f32 %v549_v13, %v550_v62  ;;  %v2798_v46 = vmax.f32 %v555_v34, %v556_v50  ;;  %v2800_v49 = vmax.f32 %v561_v15, %v562_v39 }
  0xd5   :  { %v564_v51 = vsub.f32 %v2740_v21, %v2786_v45  ;;  %v565_v19 = vsub.f32 %v2744_v58, %v2788_v56  ;;  %v566_v52 = vsub.f32 %v2748_v23, %v2790_v40  ;;  %v567_v25 = vsub.f32 %v2752_v26, %v2792_v1 }
  0xd6   :  { %v568_v28 = vsub.f32 %v2756_v47, %v2794_v41  ;;  %v569_v31 = vsub.f32 %v2760_v22, %v2796_v44  ;;  %v570_v24 = vsub.f32 %v2764_v20, %v2798_v46  ;;  %v571_v58 = vsub.f32 %v2768_v27, %v2800_v49 }
  0xd7   :  { %v572_v57 = vmul.f32 1.442695, %v564_v51  ;;  %v574_v21 = vmul.f32 1.442695, %v565_v19  ;;  %v576_v59 = vmul.f32 1.442695, %v566_v52 }
  0xd8   :  { %v578_v2 = vmul.f32 1.442695, %v567_v25  ;;  %v580_v23 = vmul.f32 1.442695, %v568_v28  ;;  %v582_v26 = vmul.f32 1.442695, %v569_v31 }
  0xd9   :  { %2041 = vpow2.f32 %v572_v57  ;;  %v584_v0 = vmul.f32 1.442695, %v570_v24  ;;  %v586_v47 = vmul.f32 1.442695, %v571_v58 }
  0xda   :  { %2043 = vpow2.f32 %v574_v21 }
  0xdb   :  { %2045 = vpow2.f32 %v576_v59 }
  0xdc   :  { %2047 = vpow2.f32 %v578_v2 }
  0xdd   :  { %2049 = vpow2.f32 %v580_v23 }
  0xde   :  { %2051 = vpow2.f32 %v582_v26 }
  0xdf   :  { %v2042_v22 = vpop.eup %2041  ;;  %2053 = vpow2.f32 %v584_v0 }
  0xe0   :  { %v2044_v20 = vpop.eup %2043  ;;  %2055 = vpow2.f32 %v586_v47  ;;  %v588_v61 = vrot.slane %v2042_v22, 4 }
  0xe1   :  { %v2046_v8 = vpop.eup %2045  ;;  %v594_v10 = vrot.slane %v2044_v20, 4 }
  0xe2   :  { %v2048_v43 = vpop.eup %2047  ;;  %v589_v27 = vadd.f32 %v2042_v22, %v588_v61  ;;  %v600_v13 = vrot.slane %v2046_v8, 4 }
  0xe3   :  { %v2050_v34 = vpop.eup %2049  ;;  %v595_v15 = vadd.f32 %v2044_v20, %v594_v10  ;;  %v606_v30 = vrot.slane %v2048_v43, 4 }
  0xe4   :  { %v2052_v36 = vpop.eup %2051  ;;  %v590_v55 = vrot.slane %v589_v27, 2  ;;  %v601_v7 = vadd.f32 %v2046_v8, %v600_v13  ;;  %v612_v37 = vrot.slane %v2050_v34, 4 }
  0xe5   :  { %v2054_v62 = vpop.eup %2053  ;;  %v596_v50 = vrot.slane %v595_v15, 2  ;;  %v607_v39 = vadd.f32 %v2048_v43, %v606_v30  ;;  %v618_v51 = vrot.slane %v2052_v36, 4 }
  0xe6   :  { %v2056_v19 = vpop.eup %2055  ;;  %v591_v52 = vadd.f32 %v590_v55, %v589_v27  ;;  %v602_v25 = vrot.slane %v601_v7, 2  ;;  %v613_v28 = vadd.f32 %v2050_v34, %v612_v37  ;;  %v624_v31 = vrot.slane %v2054_v62, 4 }
  0xe7   :  { %v597_v24 = vadd.f32 %v596_v50, %v595_v15  ;;  %v608_v57 = vrot.slane %v607_v39, 2  ;;  %v619_v21 = vadd.f32 %v2052_v36, %v618_v51  ;;  %v630_v59 = vrot.slane %v2056_v19, 4 }
  0xe8   :  { %v592_v58 = vrot.slane %v591_v52, 1  ;;  %v603_v2 = vadd.f32 %v602_v25, %v601_v7  ;;  %v614_v23 = vrot.slane %v613_v28, 2  ;;  %v625_v26 = vadd.f32 %v2054_v62, %v624_v31 }
  0xe9   :  { %v598_v0 = vrot.slane %v597_v24, 1  ;;  %v609_v47 = vadd.f32 %v608_v57, %v607_v39  ;;  %v620_v22 = vrot.slane %v619_v21, 2  ;;  %v631_v20 = vadd.f32 %v2056_v19, %v630_v59 }
  0xea   :  { %v593_v61 = vadd.f32 %v592_v58, %v591_v52  ;;  %v604_v8 = vrot.slane %v603_v2, 1  ;;  %v615_v10 = vadd.f32 %v614_v23, %v613_v28  ;;  %v626_v43 = vrot.slane %v625_v26, 2 }
  0xeb   :  { %v599_v27 = vadd.f32 %v598_v0, %v597_v24  ;;  %v610_v13 = vrot.slane %v609_v47, 1  ;;  %v621_v34 = vadd.f32 %v620_v22, %v619_v21  ;;  %v632_v30 = vrot.slane %v631_v20, 2 }
  0xec   :  { %v605_v15 = vadd.f32 %v604_v8, %v603_v2  ;;  %v616_v55 = vrot.slane %v615_v10, 1  ;;  %v627_v36 = vadd.f32 %v626_v43, %v625_v26  ;;  %2057 = vlog2.f32 %v593_v61 }
  0xed   :  { %v611_v37 = vadd.f32 %v610_v13, %v609_v47  ;;  %v622_v7 = vrot.slane %v621_v34, 1  ;;  %v633_v50 = vadd.f32 %v632_v30, %v631_v20  ;;  %2059 = vlog2.f32 %v599_v27 }
  0xee   :  { %v617_v62 = vadd.f32 %v616_v55, %v615_v10  ;;  %v628_v39 = vrot.slane %v627_v36, 1  ;;  %2061 = vlog2.f32 %v605_v15  ;;  %v661_v58 = vrot.slane %v2576_v3, 1 }
  0xef   :  { %v623_v51 = vadd.f32 %v622_v7, %v621_v34  ;;  %v634_v19 = vrot.slane %v633_v50, 1  ;;  %2063 = vlog2.f32 %v611_v37  ;;  %v662_v0 = vrot.slane %v2576_v3, 2 }
  0xf0   :  { %v629_v52 = vadd.f32 %v628_v39, %v627_v36  ;;  %2065 = vlog2.f32 %v617_v62  ;;  %v663_v47 = vrot.slane %v2576_v3, 3  ;;  %v664_v8 = vrot.slane %v2576_v3, 4 }
  0xf1   :  { %v635_v25 = vadd.f32 %v634_v19, %v633_v50  ;;  %2067 = vlog2.f32 %v623_v51  ;;  %v665_v10 = vrot.slane %v2576_v3, 5  ;;  %v666_v34 = vrot.slane %v2576_v3, 6 }
  0xf2   :  { %v2058_v28 = vpop.eup %2057  ;;  %2069 = vlog2.f32 %v629_v52 }
  0xf3   :  { %v2060_v31 = vpop.eup %2059  ;;  %v637_v24 = vmul.f32 0.6931472, %v2058_v28  ;;  %2071 = vlog2.f32 %v635_v25 }
  0xf4   :  { %v2062_v57 = vpop.eup %2061  ;;  %v639_v21 = vmul.f32 0.6931472, %v2060_v31 }
  0xf5   :  { %v2064_v59 = vpop.eup %2063  ;;  %v641_v2 = vmul.f32 0.6931472, %v2062_v57  ;;  %v652_v23 = vadd.f32 %v637_v24, %v2786_v45 }
  0xf6   :  { %v2066_v26 = vpop.eup %2065  ;;  %v643_v22 = vmul.f32 0.6931472, %v2064_v59  ;;  %v653_v20 = vadd.f32 %v639_v21, %v2788_v56 }
  0xf7   :  { %v2068_v61 = vpop.eup %2067  ;;  %v645_v43 = vmul.f32 0.6931472, %v2066_v26  ;;  %v654_v27 = vadd.f32 %v641_v2, %v2790_v40  ;;  %v676_v56 = vadd.f32 %v652_v23, %v2576_v3  ;;  %v667_v40 = vrot.slane %v2576_v3, 7 }
  0xf8   :  { %v2070_v13 = vpop.eup %2069  ;;  %v647_v45 = vmul.f32 0.6931472, %v2068_v61  ;;  %v655_v30 = vadd.f32 %v643_v22, %v2792_v1  ;;  %v677_v15 = vadd.f32 %v661_v58, %v653_v20 }
  0xf9   :  { %v2072_v55 = vpop.eup %2071  ;;  %v649_v36 = vmul.f32 0.6931472, %v2070_v13  ;;  %v656_v37 = vadd.f32 %v645_v43, %v2794_v41  ;;  %v678_v7 = vadd.f32 %v662_v0, %v654_v27 }
  0xfa   :  { %v651_v50 = vmul.f32 0.6931472, %v2072_v55  ;;  %v657_v62 = vadd.f32 %v647_v45, %v2796_v44  ;;  %v679_v39 = vadd.f32 %v663_v47, %v655_v30  ;;  %v694_v51 = vrot.slane %v677_v15, 7 }
  0xfb   :  { %v658_v19 = vadd.f32 %v649_v36, %v2798_v46  ;;  %v680_v52 = vadd.f32 %v664_v8, %v656_v37  ;;  %v696_v25 = vrot.slane %v678_v7, 6 }
  0xfc   :  { %v659_v1 = vadd.f32 %v651_v50, %v2800_v49  ;;  %v681_v28 = vadd.f32 %v665_v10, %v657_v62  ;;  %v695_v31 = vsel %vm3547_vm3, %v694_v51, %v676_v56  ;;  %v698_v41 = vrot.slane %v679_v39, 5 }
  0xfd   :  { %v682_v24 = vadd.f32 %v666_v34, %v658_v19  ;;  %v697_v57 = vsel %vm3548_vm12, %v696_v25, %v695_v31  ;;  %v700_v21 = vrot.slane %v680_v52, 4 }
  0xfe   :  { %v683_v59 = vadd.f32 %v667_v40, %v659_v1  ;;  %v699_v44 = vsel %vm3549_vm8, %v698_v41, %v697_v57  ;;  %v702_v58 = vrot.slane %v681_v28, 3  ;;  %vm3558_vm8 = vmmov %vm3550_vm10 }
  0xff   :  { %v701_v3 = vsel %vm3550_vm10, %v700_v21, %v699_v44  ;;  %v704_v2 = vrot.slane %v682_v24, 2 }
 0x100   :  { %v703_v46 = vsel %vm493_vm6, %v702_v58, %v701_v3  ;;  %v706_v23 = vrot.slane %v683_v59, 1 }
 0x101   :  { %v705_v49 = vsel %vm496_vm1, %v704_v2, %v703_v46 }
 0x102   :  { %v707_v26 = vsel %vm499_vm2, %v706_v23, %v705_v49 }
 0x103   :  { %v2844_v0 = vsel %vm2546_vm5, %v707_v26, %v2734_v17  ;;  %vm3551_vm5 = vmmov %vm3547_vm3 }
 0x104   :  { %v2848_v47 = vadd.f32 %v2844_v0, %v2468_v4  ;;  %v2852_v22 = vadd.f32 %v2844_v0, %v2470_v6  ;;  %v2856_v20 = vadd.f32 %v2844_v0, %v2478_v18  ;;  %v2860_v61 = vadd.f32 %v2844_v0, %v2476_v16 }
 0x105   :  { %v2864_v33 = vadd.f32 %v2844_v0, %v2454_v48  ;;  %v2868_v17 = vadd.f32 %v2844_v0, %v2458_v53  ;;  %v2872_v8 = vadd.f32 %v2844_v0, %v2492_v42  ;;  %v2876_v10 = vadd.f32 %v2844_v0, %v2490_v38 }
 0x106   :  { %v723_v43 = vrot.slane %v2848_v47, 4  ;;  %v729_v27 = vrot.slane %v2852_v22, 4  ;;  %v735_v13 = vrot.slane %v2856_v20, 4  ;;  %v741_v34 = vrot.slane %v2860_v61, 4 }
 0x107   :  { %v747_v45 = vrot.slane %v2864_v33, 4  ;;  %v753_v30 = vrot.slane %v2868_v17, 4  ;;  %v759_v15 = vrot.slane %v2872_v8, 4  ;;  %v765_v55 = vrot.slane %v2876_v10, 4 }
 0x108   :  { %v724_v36 = vmax.f32 %v2848_v47, %v723_v43  ;;  %v730_v37 = vmax.f32 %v2852_v22, %v729_v27  ;;  %v736_v56 = vmax.f32 %v2856_v20, %v735_v13  ;;  %v742_v7 = vmax.f32 %v2860_v61, %v741_v34 }
 0x109   :  { %v748_v50 = vmax.f32 %v2864_v33, %v747_v45  ;;  %v754_v62 = vmax.f32 %v2868_v17, %v753_v30  ;;  %v760_v39 = vmax.f32 %v2872_v8, %v759_v15  ;;  %v766_v51 = vmax.f32 %v2876_v10, %v765_v55 }
 0x10a   :  { %v725_v40 = vrot.slane %v724_v36, 2  ;;  %v731_v19 = vrot.slane %v730_v37, 2  ;;  %v737_v52 = vrot.slane %v736_v56, 2  ;;  %v743_v25 = vrot.slane %v742_v7, 2 }
 0x10b   :  { %v749_v1 = vrot.slane %v748_v50, 2  ;;  %v755_v28 = vrot.slane %v754_v62, 2  ;;  %v761_v31 = vrot.slane %v760_v39, 2  ;;  %v767_v41 = vrot.slane %v766_v51, 2 }
 0x10c   :  { %v726_v24 = vmax.f32 %v724_v36, %v725_v40  ;;  %v732_v57 = vmax.f32 %v730_v37, %v731_v19  ;;  %v738_v21 = vmax.f32 %v736_v56, %v737_v52  ;;  %v744_v59 = vmax.f32 %v742_v7, %v743_v25 }
 0x10d   :  { %v750_v44 = vmax.f32 %v748_v50, %v749_v1  ;;  %v756_v58 = vmax.f32 %v754_v62, %v755_v28  ;;  %v762_v3 = vmax.f32 %v760_v39, %v761_v31  ;;  %v768_v2 = vmax.f32 %v766_v51, %v767_v41 }
 0x10e   :  { %v727_v46 = vrot.slane %v726_v24, 1  ;;  %v733_v23 = vrot.slane %v732_v57, 1  ;;  %v739_v49 = vrot.slane %v738_v21, 1  ;;  %v745_v26 = vrot.slane %v744_v59, 1 }
 0x10f   :  { %v751_v43 = vrot.slane %v750_v44, 1  ;;  %v757_v27 = vrot.slane %v756_v58, 1  ;;  %v763_v13 = vrot.slane %v762_v3, 1  ;;  %v769_v34 = vrot.slane %v768_v2, 1 }
 0x110   :  { %v2894_v45 = vmax.f32 %v726_v24, %v727_v46  ;;  %v2896_v30 = vmax.f32 %v732_v57, %v733_v23  ;;  %v2898_v15 = vmax.f32 %v738_v21, %v739_v49  ;;  %v2900_v55 = vmax.f32 %v744_v59, %v745_v26 }
 0x111   :  { %v2902_v36 = vmax.f32 %v750_v44, %v751_v43  ;;  %v2904_v37 = vmax.f32 %v756_v58, %v757_v27  ;;  %v2906_v56 = vmax.f32 %v762_v3, %v763_v13  ;;  %v2908_v7 = vmax.f32 %v768_v2, %v769_v34 }
 0x112   :  { %v771_v50 = vsub.f32 %v2848_v47, %v2894_v45  ;;  %v772_v62 = vsub.f32 %v2852_v22, %v2896_v30  ;;  %v773_v39 = vsub.f32 %v2856_v20, %v2898_v15  ;;  %v774_v51 = vsub.f32 %v2860_v61, %v2900_v55 }
 0x113   :  { %v775_v40 = vsub.f32 %v2864_v33, %v2902_v36  ;;  %v776_v19 = vsub.f32 %v2868_v17, %v2904_v37  ;;  %v777_v52 = vsub.f32 %v2872_v8, %v2906_v56  ;;  %v778_v22 = vsub.f32 %v2876_v10, %v2908_v7 }
 0x114   :  { %v779_v25 = vmul.f32 1.442695, %v771_v50  ;;  %v781_v47 = vmul.f32 1.442695, %v772_v62  ;;  %v783_v1 = vmul.f32 1.442695, %v773_v39 }
 0x115   :  { %v785_v28 = vmul.f32 1.442695, %v774_v51  ;;  %v787_v20 = vmul.f32 1.442695, %v775_v40  ;;  %v789_v61 = vmul.f32 1.442695, %v776_v19 }
 0x116   :  { %2073 = vpow2.f32 %v779_v25  ;;  %v791_v31 = vmul.f32 1.442695, %v777_v52  ;;  %v793_v33 = vmul.f32 1.442695, %v778_v22 }
 0x117   :  { %2075 = vpow2.f32 %v781_v47 }
 0x118   :  { %2077 = vpow2.f32 %v783_v1 }
 0x119   :  { %2079 = vpow2.f32 %v785_v28 }
 0x11a   :  { %2081 = vpow2.f32 %v787_v20 }
 0x11b   :  { %2083 = vpow2.f32 %v789_v61 }
 0x11c   :  { %v2074_v17 = vpop.eup %2073  ;;  %2085 = vpow2.f32 %v791_v31 }
 0x11d   :  { %v2076_v8 = vpop.eup %2075  ;;  %2087 = vpow2.f32 %v793_v33  ;;  %v795_v41 = vrot.slane %v2074_v17, 4 }
 0x11e   :  { %v2078_v24 = vpop.eup %2077  ;;  %v801_v57 = vrot.slane %v2076_v8, 4 }
 0x11f   :  { %v2080_v21 = vpop.eup %2079  ;;  %v796_v10 = vadd.f32 %v2074_v17, %v795_v41  ;;  %v807_v59 = vrot.slane %v2078_v24, 4 }
 0x120   :  { %v2082_v44 = vpop.eup %2081  ;;  %v802_v58 = vadd.f32 %v2076_v8, %v801_v57  ;;  %v813_v3 = vrot.slane %v2080_v21, 4 }
 0x121   :  { %v2084_v2 = vpop.eup %2083  ;;  %v797_v46 = vrot.slane %v796_v10, 2  ;;  %v808_v23 = vadd.f32 %v2078_v24, %v807_v59  ;;  %v819_v49 = vrot.slane %v2082_v44, 4 }
 0x122   :  { %v2086_v26 = vpop.eup %2085  ;;  %v803_v43 = vrot.slane %v802_v58, 2  ;;  %v814_v27 = vadd.f32 %v2080_v21, %v813_v3  ;;  %v825_v13 = vrot.slane %v2084_v2, 4 }
 0x123   :  { %v2088_v34 = vpop.eup %2087  ;;  %v798_v50 = vadd.f32 %v797_v46, %v796_v10  ;;  %v809_v62 = vrot.slane %v808_v23, 2  ;;  %v820_v39 = vadd.f32 %v2082_v44, %v819_v49  ;;  %v831_v51 = vrot.slane %v2086_v26, 4 }
 0x124   :  { %v804_v40 = vadd.f32 %v803_v43, %v802_v58  ;;  %v815_v19 = vrot.slane %v814_v27, 2  ;;  %v826_v52 = vadd.f32 %v2084_v2, %v825_v13  ;;  %v837_v25 = vrot.slane %v2088_v34, 4 }
 0x125   :  { %v799_v47 = vrot.slane %v798_v50, 1  ;;  %v810_v1 = vadd.f32 %v809_v62, %v808_v23  ;;  %v821_v22 = vrot.slane %v820_v39, 2  ;;  %v832_v28 = vadd.f32 %v2086_v26, %v831_v51 }
 0x126   :  { %v805_v20 = vrot.slane %v804_v40, 1  ;;  %v816_v61 = vadd.f32 %v815_v19, %v814_v27  ;;  %v827_v31 = vrot.slane %v826_v52, 2  ;;  %v838_v33 = vadd.f32 %v2088_v34, %v837_v25 }
 0x127   :  { %v800_v17 = vadd.f32 %v799_v47, %v798_v50  ;;  %v811_v8 = vrot.slane %v810_v1, 1  ;;  %v822_v41 = vadd.f32 %v821_v22, %v820_v39  ;;  %v833_v24 = vrot.slane %v832_v28, 2 }
 0x128   :  { %v806_v57 = vadd.f32 %v805_v20, %v804_v40  ;;  %v817_v21 = vrot.slane %v816_v61, 1  ;;  %v828_v10 = vadd.f32 %v827_v31, %v826_v52  ;;  %v839_v59 = vrot.slane %v838_v33, 2 }
 0x129   :  { %v812_v44 = vadd.f32 %v811_v8, %v810_v1  ;;  %v823_v58 = vrot.slane %v822_v41, 1  ;;  %v834_v3 = vadd.f32 %v833_v24, %v832_v28  ;;  %2089 = vlog2.f32 %v800_v17 }
 0x12a   :  { %v818_v2 = vadd.f32 %v817_v21, %v816_v61  ;;  %v829_v46 = vrot.slane %v828_v10, 1  ;;  %v840_v23 = vadd.f32 %v839_v59, %v838_v33  ;;  %2091 = vlog2.f32 %v806_v57 }
 0x12b   :  { %v824_v49 = vadd.f32 %v823_v58, %v822_v41  ;;  %v835_v26 = vrot.slane %v834_v3, 1  ;;  %2093 = vlog2.f32 %v812_v44  ;;  %v868_v52 = vrot.slane %v2580_v9, 1 }
 0x12c   :  { %v830_v43 = vadd.f32 %v829_v46, %v828_v10  ;;  %v841_v27 = vrot.slane %v840_v23, 1  ;;  %2095 = vlog2.f32 %v818_v2  ;;  %v869_v22 = vrot.slane %v2580_v9, 2 }
 0x12d   :  { %v836_v13 = vadd.f32 %v835_v26, %v834_v3  ;;  %2097 = vlog2.f32 %v824_v49  ;;  %v870_v28 = vrot.slane %v2580_v9, 3  ;;  %v871_v33 = vrot.slane %v2580_v9, 4 }
 0x12e   :  { %v842_v34 = vadd.f32 %v841_v27, %v840_v23  ;;  %2099 = vlog2.f32 %v830_v43  ;;  %v872_v17 = vrot.slane %v2580_v9, 5  ;;  %v873_v57 = vrot.slane %v2580_v9, 6 }
 0x12f   :  { %v2090_v50 = vpop.eup %2089  ;;  %2101 = vlog2.f32 %v836_v13 }
 0x130   :  { %v2092_v62 = vpop.eup %2091  ;;  %v844_v39 = vmul.f32 0.6931472, %v2090_v50  ;;  %2103 = vlog2.f32 %v842_v34 }
 0x131   :  { %v2094_v51 = vpop.eup %2093  ;;  %v846_v40 = vmul.f32 0.6931472, %v2092_v62 }
 0x132   :  { %v2096_v19 = vpop.eup %2095  ;;  %v848_v25 = vmul.f32 0.6931472, %v2094_v51  ;;  %v859_v47 = vadd.f32 %v844_v39, %v2894_v45 }
 0x133   :  { %v2098_v1 = vpop.eup %2097  ;;  %v850_v20 = vmul.f32 0.6931472, %v2096_v19  ;;  %v860_v61 = vadd.f32 %v846_v40, %v2896_v30 }
 0x134   :  { %v2100_v31 = vpop.eup %2099  ;;  %v852_v8 = vmul.f32 0.6931472, %v2098_v1  ;;  %v861_v41 = vadd.f32 %v848_v25, %v2898_v15  ;;  %v883_v30 = vadd.f32 %v859_v47, %v2580_v9  ;;  %v874_v15 = vrot.slane %v2580_v9, 7 }
 0x135   :  { %v2102_v24 = vpop.eup %2101  ;;  %v854_v45 = vmul.f32 0.6931472, %v2100_v31  ;;  %v862_v21 = vadd.f32 %v850_v20, %v2900_v55  ;;  %v884_v10 = vadd.f32 %v868_v52, %v860_v61 }
 0x136   :  { %v2104_v59 = vpop.eup %2103  ;;  %v856_v44 = vmul.f32 0.6931472, %v2102_v24  ;;  %v863_v58 = vadd.f32 %v852_v8, %v2902_v36  ;;  %v885_v3 = vadd.f32 %v869_v22, %v861_v41 }
 0x137   :  { %v858_v2 = vmul.f32 0.6931472, %v2104_v59  ;;  %v864_v46 = vadd.f32 %v854_v45, %v2904_v37  ;;  %v886_v23 = vadd.f32 %v870_v28, %v862_v21  ;;  %v901_v49 = vrot.slane %v884_v10, 7 }
 0x138   :  { %v865_v26 = vadd.f32 %v856_v44, %v2906_v56  ;;  %v887_v43 = vadd.f32 %v871_v33, %v863_v58  ;;  %v903_v27 = vrot.slane %v885_v3, 6 }
 0x139   :  { %v866_v55 = vadd.f32 %v858_v2, %v2908_v7  ;;  %v888_v13 = vadd.f32 %v872_v17, %v864_v46  ;;  %v902_v34 = vsel %vm3551_vm5, %v901_v49, %v883_v30  ;;  %v905_v36 = vrot.slane %v886_v23, 5 }
 0x13a   :  { %v889_v50 = vadd.f32 %v873_v57, %v865_v26  ;;  %v904_v62 = vsel %vm3552_vm15, %v903_v27, %v902_v34  ;;  %v907_v39 = vrot.slane %v887_v43, 4  ;;  %vm3562_vm15 = vmmov %vm3558_vm8 }
 0x13b   :  { %v890_v51 = vadd.f32 %v874_v15, %v866_v55  ;;  %v906_v37 = vsel %vm3553_vm0, %v905_v36, %v904_v62  ;;  %v909_v40 = vrot.slane %v888_v13, 3 }
 0x13c   :  { %v908_v9 = vsel %vm3554_vm13, %v907_v39, %v906_v37  ;;  %v911_v19 = vrot.slane %v889_v50, 2 }
 0x13d   :  { %v910_v56 = vsel %vm493_vm6, %v909_v40, %v908_v9  ;;  %v913_v52 = vrot.slane %v890_v51, 1 }
 0x13e   :  { %v912_v7 = vsel %vm496_vm1, %v911_v19, %v910_v56 }
 0x13f   :  { %v914_v25 = vsel %vm499_vm2, %v913_v52, %v912_v7 }
 0x140   :  { %v2952_v47 = vsel %vm2557_vm7, %v914_v25, %v2844_v0  ;;  %vm3555_vm7 = vmmov %vm3547_vm3 }
 0x141   :  { %v2956_v1 = vadd.f32 %v2952_v47, %v2468_v4  ;;  %v2960_v22 = vadd.f32 %v2952_v47, %v2470_v6  ;;  %v2964_v28 = vadd.f32 %v2952_v47, %v2478_v18  ;;  %v2968_v20 = vadd.f32 %v2952_v47, %v2476_v16  ;;  %vm3556_vm3 = vmmov %vm3548_vm12 }
 0x142   :  { %v2972_v54 = vadd.f32 %v2952_v47, %v2454_v48  ;;  %v2976_v0 = vadd.f32 %v2952_v47, %v2458_v53  ;;  %v2980_v61 = vadd.f32 %v2952_v47, %v2492_v42  ;;  %v2984_v31 = vadd.f32 %v2952_v47, %v2490_v38  ;;  %vm3557_vm12 = vmmov %vm3553_vm0 }
 0x143   :  { %v930_v33 = vrot.slane %v2956_v1, 4  ;;  %v936_v17 = vrot.slane %v2960_v22, 4  ;;  %v942_v8 = vrot.slane %v2964_v28, 4  ;;  %v948_v41 = vrot.slane %v2968_v20, 4  ;;  %vm3560_vm10 = vmmov %vm3556_vm3 }
 0x144   :  { %v954_v24 = vrot.slane %v2972_v54, 4  ;;  %v960_v57 = vrot.slane %v2976_v0, 4  ;;  %v966_v45 = vrot.slane %v2980_v61, 4  ;;  %v972_v21 = vrot.slane %v2984_v31, 4  ;;  %vm3564_vm13 = vmmov %vm3555_vm7 }
 0x145   :  { %v931_v10 = vmax.f32 %v2956_v1, %v930_v33  ;;  %v937_v59 = vmax.f32 %v2960_v22, %v936_v17  ;;  %v943_v44 = vmax.f32 %v2964_v28, %v942_v8  ;;  %v949_v58 = vmax.f32 %v2968_v20, %v948_v41 }
 0x146   :  { %v955_v30 = vmax.f32 %v2972_v54, %v954_v24  ;;  %v961_v3 = vmax.f32 %v2976_v0, %v960_v57  ;;  %v967_v2 = vmax.f32 %v2980_v61, %v966_v45  ;;  %v973_v46 = vmax.f32 %v2984_v31, %v972_v21 }
 0x147   :  { %v932_v23 = vrot.slane %v931_v10, 2  ;;  %v938_v49 = vrot.slane %v937_v59, 2  ;;  %v944_v15 = vrot.slane %v943_v44, 2  ;;  %v950_v26 = vrot.slane %v949_v58, 2 }
 0x148   :  { %v956_v43 = vrot.slane %v955_v30, 2  ;;  %v962_v27 = vrot.slane %v961_v3, 2  ;;  %v968_v55 = vrot.slane %v967_v2, 2  ;;  %v974_v13 = vrot.slane %v973_v46, 2 }
 0x149   :  { %v933_v34 = vmax.f32 %v931_v10, %v932_v23  ;;  %v939_v36 = vmax.f32 %v937_v59, %v938_v49  ;;  %v945_v50 = vmax.f32 %v943_v44, %v944_v15  ;;  %v951_v62 = vmax.f32 %v949_v58, %v950_v26 }
 0x14a   :  { %v957_v39 = vmax.f32 %v955_v30, %v956_v43  ;;  %v963_v51 = vmax.f32 %v961_v3, %v962_v27  ;;  %v969_v37 = vmax.f32 %v967_v2, %v968_v55  ;;  %v975_v40 = vmax.f32 %v973_v46, %v974_v13 }
 0x14b   :  { %v934_v9 = vrot.slane %v933_v34, 1  ;;  %v940_v19 = vrot.slane %v939_v36, 1  ;;  %v946_v56 = vrot.slane %v945_v50, 1  ;;  %v952_v52 = vrot.slane %v951_v62, 1 }
 0x14c   :  { %v958_v7 = vrot.slane %v957_v39, 1  ;;  %v964_v25 = vrot.slane %v963_v51, 1  ;;  %v970_v33 = vrot.slane %v969_v37, 1  ;;  %v976_v17 = vrot.slane %v975_v40, 1 }
 0x14d   :  { %v3002_v8 = vmax.f32 %v933_v34, %v934_v9  ;;  %v3004_v41 = vmax.f32 %v939_v36, %v940_v19  ;;  %v3006_v24 = vmax.f32 %v945_v50, %v946_v56  ;;  %v3008_v57 = vmax.f32 %v951_v62, %v952_v52 }
 0x14e   :  { %v3010_v45 = vmax.f32 %v957_v39, %v958_v7  ;;  %v3012_v21 = vmax.f32 %v963_v51, %v964_v25  ;;  %v3014_v10 = vmax.f32 %v969_v37, %v970_v33  ;;  %v3016_v59 = vmax.f32 %v975_v40, %v976_v17 }
 0x14f   :  { %v978_v44 = vsub.f32 %v2956_v1, %v3002_v8  ;;  %v979_v58 = vsub.f32 %v2960_v22, %v3004_v41  ;;  %v980_v30 = vsub.f32 %v2964_v28, %v3006_v24  ;;  %v981_v3 = vsub.f32 %v2968_v20, %v3008_v57 }
 0x150   :  { %v982_v2 = vsub.f32 %v2972_v54, %v3010_v45  ;;  %v983_v46 = vsub.f32 %v2976_v0, %v3012_v21  ;;  %v984_v23 = vsub.f32 %v2980_v61, %v3014_v10  ;;  %v985_v22 = vsub.f32 %v2984_v31, %v3016_v59 }
 0x151   :  { %v986_v49 = vmul.f32 1.442695, %v978_v44  ;;  %v988_v1 = vmul.f32 1.442695, %v979_v58  ;;  %v990_v15 = vmul.f32 1.442695, %v980_v30 }
 0x152   :  { %v992_v26 = vmul.f32 1.442695, %v981_v3  ;;  %v994_v28 = vmul.f32 1.442695, %v982_v2  ;;  %v996_v20 = vmul.f32 1.442695, %v983_v46 }
 0x153   :  { %2105 = vpow2.f32 %v986_v49  ;;  %v998_v43 = vmul.f32 1.442695, %v984_v23  ;;  %v1000_v54 = vmul.f32 1.442695, %v985_v22 }
 0x154   :  { %2107 = vpow2.f32 %v988_v1 }
 0x155   :  { %2109 = vpow2.f32 %v990_v15 }
 0x156   :  { %2111 = vpow2.f32 %v992_v26 }
 0x157   :  { %2113 = vpow2.f32 %v994_v28 }
 0x158   :  { %2115 = vpow2.f32 %v996_v20 }
 0x159   :  { %v2106_v0 = vpop.eup %2105  ;;  %2117 = vpow2.f32 %v998_v43 }
 0x15a   :  { %v2108_v61 = vpop.eup %2107  ;;  %2119 = vpow2.f32 %v1000_v54  ;;  %v1002_v27 = vrot.slane %v2106_v0, 4 }
 0x15b   :  { %v2110_v55 = vpop.eup %2109  ;;  %v1008_v13 = vrot.slane %v2108_v61, 4 }
 0x15c   :  { %v2112_v34 = vpop.eup %2111  ;;  %v1003_v31 = vadd.f32 %v2106_v0, %v1002_v27  ;;  %v1014_v36 = vrot.slane %v2110_v55, 4 }
 0x15d   :  { %v2114_v50 = vpop.eup %2113  ;;  %v1009_v62 = vadd.f32 %v2108_v61, %v1008_v13  ;;  %v1020_v39 = vrot.slane %v2112_v34, 4 }
 0x15e   :  { %v2116_v51 = vpop.eup %2115  ;;  %v1004_v37 = vrot.slane %v1003_v31, 2  ;;  %v1015_v40 = vadd.f32 %v2110_v55, %v1014_v36  ;;  %v1026_v9 = vrot.slane %v2114_v50, 4 }
 0x15f   :  { %v2118_v19 = vpop.eup %2117  ;;  %v1010_v56 = vrot.slane %v1009_v62, 2  ;;  %v1021_v52 = vadd.f32 %v2112_v34, %v1020_v39  ;;  %v1032_v7 = vrot.slane %v2116_v51, 4 }
 0x160   :  { %v2120_v25 = vpop.eup %2119  ;;  %v1005_v33 = vadd.f32 %v1004_v37, %v1003_v31  ;;  %v1016_v17 = vrot.slane %v1015_v40, 2  ;;  %v1027_v44 = vadd.f32 %v2114_v50, %v1026_v9  ;;  %v1038_v58 = vrot.slane %v2118_v19, 4 }
 0x161   :  { %v1011_v30 = vadd.f32 %v1010_v56, %v1009_v62  ;;  %v1022_v3 = vrot.slane %v1021_v52, 2  ;;  %v1033_v2 = vadd.f32 %v2116_v51, %v1032_v7  ;;  %v1044_v46 = vrot.slane %v2120_v25, 4 }
 0x162   :  { %v1006_v23 = vrot.slane %v1005_v33, 1  ;;  %v1017_v49 = vadd.f32 %v1016_v17, %v1015_v40  ;;  %v1028_v1 = vrot.slane %v1027_v44, 2  ;;  %v1039_v15 = vadd.f32 %v2118_v19, %v1038_v58 }
 0x163   :  { %v1012_v22 = vrot.slane %v1011_v30, 1  ;;  %v1023_v26 = vadd.f32 %v1022_v3, %v1021_v52  ;;  %v1034_v28 = vrot.slane %v1033_v2, 2  ;;  %v1045_v20 = vadd.f32 %v2120_v25, %v1044_v46 }
 0x164   :  { %v1007_v43 = vadd.f32 %v1006_v23, %v1005_v33  ;;  %v1018_v54 = vrot.slane %v1017_v49, 1  ;;  %v1029_v0 = vadd.f32 %v1028_v1, %v1027_v44  ;;  %v1040_v61 = vrot.slane %v1039_v15, 2 }
 0x165   :  { %v1013_v27 = vadd.f32 %v1012_v22, %v1011_v30  ;;  %v1024_v55 = vrot.slane %v1023_v26, 1  ;;  %v1035_v13 = vadd.f32 %v1034_v28, %v1033_v2  ;;  %v1046_v34 = vrot.slane %v1045_v20, 2 }
 0x166   :  { %v1019_v31 = vadd.f32 %v1018_v54, %v1017_v49  ;;  %v1030_v36 = vrot.slane %v1029_v0, 1  ;;  %v1041_v50 = vadd.f32 %v1040_v61, %v1039_v15  ;;  %2121 = vlog2.f32 %v1007_v43 }
 0x167   :  { %v1025_v62 = vadd.f32 %v1024_v55, %v1023_v26  ;;  %v1036_v39 = vrot.slane %v1035_v13, 1  ;;  %v1047_v51 = vadd.f32 %v1046_v34, %v1045_v20  ;;  %2123 = vlog2.f32 %v1013_v27 }
 0x168   :  { %v1031_v37 = vadd.f32 %v1030_v36, %v1029_v0  ;;  %v1042_v40 = vrot.slane %v1041_v50, 1  ;;  %2125 = vlog2.f32 %v1019_v31  ;;  %v1075_v30 = vrot.slane %v2583_v11, 1 }
 0x169   :  { %v1037_v9 = vadd.f32 %v1036_v39, %v1035_v13  ;;  %v1048_v19 = vrot.slane %v1047_v51, 1  ;;  %2127 = vlog2.f32 %v1025_v62  ;;  %v1076_v23 = vrot.slane %v2583_v11, 2 }
 0x16a   :  { %v1043_v56 = vadd.f32 %v1042_v40, %v1041_v50  ;;  %2129 = vlog2.f32 %v1031_v37  ;;  %v1077_v49 = vrot.slane %v2583_v11, 3  ;;  %v1078_v26 = vrot.slane %v2583_v11, 4 }
 0x16b   :  { %v1049_v52 = vadd.f32 %v1048_v19, %v1047_v51  ;;  %2131 = vlog2.f32 %v1037_v9  ;;  %v1079_v28 = vrot.slane %v2583_v11, 5  ;;  %v1080_v0 = vrot.slane %v2583_v11, 6 }
 0x16c   :  { %v2122_v7 = vpop.eup %2121  ;;  %2133 = vlog2.f32 %v1043_v56 }
 0x16d   :  { %v2124_v25 = vpop.eup %2123  ;;  %v1051_v33 = vmul.f32 0.6931472, %v2122_v7  ;;  %2135 = vlog2.f32 %v1049_v52 }
 0x16e   :  { %v2126_v17 = vpop.eup %2125  ;;  %v1053_v44 = vmul.f32 0.6931472, %v2124_v25 }
 0x16f   :  { %v2128_v58 = vpop.eup %2127  ;;  %v1055_v3 = vmul.f32 0.6931472, %v2126_v17  ;;  %v1066_v2 = vadd.f32 %v1051_v33, %v3002_v8 }
 0x170   :  { %v2130_v46 = vpop.eup %2129  ;;  %v1057_v1 = vmul.f32 0.6931472, %v2128_v58  ;;  %v1067_v15 = vadd.f32 %v1053_v44, %v3004_v41 }
 0x171   :  { %v2132_v22 = vpop.eup %2131  ;;  %v1059_v20 = vmul.f32 0.6931472, %v2130_v46  ;;  %v1068_v43 = vadd.f32 %v1055_v3, %v3006_v24  ;;  %v1090_v41 = vadd.f32 %v1066_v2, %v2583_v11  ;;  %v1081_v24 = vrot.slane %v2583_v11, 7 }
 0x172   :  { %v2134_v54 = vpop.eup %2133  ;;  %v1061_v8 = vmul.f32 0.6931472, %v2132_v22  ;;  %v1069_v61 = vadd.f32 %v1057_v1, %v3008_v57  ;;  %v1091_v27 = vadd.f32 %v1075_v30, %v1067_v15 }
 0x173   :  { %v2136_v55 = vpop.eup %2135  ;;  %v1063_v13 = vmul.f32 0.6931472, %v2134_v54  ;;  %v1070_v34 = vadd.f32 %v1059_v20, %v3010_v45  ;;  %v1092_v31 = vadd.f32 %v1076_v23, %v1068_v43 }
 0x174   :  { %v1065_v36 = vmul.f32 0.6931472, %v2136_v55  ;;  %v1071_v50 = vadd.f32 %v1061_v8, %v3012_v21  ;;  %v1093_v62 = vadd.f32 %v1077_v49, %v1069_v61  ;;  %v1108_v39 = vrot.slane %v1091_v27, 7 }
 0x175   :  { %v1072_v51 = vadd.f32 %v1063_v13, %v3014_v10  ;;  %v1094_v37 = vadd.f32 %v1078_v26, %v1070_v34  ;;  %v1110_v40 = vrot.slane %v1092_v31, 6 }
 0x176   :  { %v1073_v57 = vadd.f32 %v1065_v36, %v3016_v59  ;;  %v1095_v9 = vadd.f32 %v1079_v28, %v1071_v50  ;;  %v1109_v19 = vsel %vm3555_vm7, %v1108_v39, %v1090_v41  ;;  %v1112_v45 = vrot.slane %v1093_v62, 5  ;;  %vm3565_vm7 = vmmov %vm3556_vm3 }
 0x177   :  { %v1096_v56 = vadd.f32 %v1080_v0, %v1072_v51  ;;  %v1111_v52 = vsel %vm3556_vm3, %v1110_v40, %v1109_v19  ;;  %v1114_v7 = vrot.slane %v1094_v37, 4 }
 0x178   :  { %v1097_v25 = vadd.f32 %v1081_v24, %v1073_v57  ;;  %v1113_v21 = vsel %vm3557_vm12, %v1112_v45, %v1111_v52  ;;  %v1116_v33 = vrot.slane %v1095_v9, 3  ;;  %vm3567_vm12 = vmmov %vm3558_vm8 }
 0x179   :  { %v1115_v11 = vsel %vm3558_vm8, %v1114_v7, %v1113_v21  ;;  %v1118_v17 = vrot.slane %v1096_v56, 2  ;;  %vm3569_vm8 = vmmov %vm3565_vm7 }
 0x17a   :  { %v1117_v10 = vsel %vm493_vm6, %v1116_v33, %v1115_v11  ;;  %v1120_v44 = vrot.slane %v1097_v25, 1 }
 0x17b   :  { %v1119_v59 = vsel %vm496_vm1, %v1118_v17, %v1117_v10 }
 0x17c   :  { %v1121_v58 = vsel %vm499_vm2, %v1120_v44, %v1119_v59 }
 0x17d   :  { %v3060_v30 = vsel %vm2566_vm9, %v1121_v58, %v2952_v47  ;;  %vm3559_vm9 = vmmov %vm3551_vm5 }
 0x17e   :  { %v3064_v3 = vadd.f32 %v3060_v30, %v2468_v4  ;;  %v3068_v2 = vadd.f32 %v3060_v30, %v2470_v6  ;;  %v3072_v46 = vadd.f32 %v3060_v30, %v2478_v18  ;;  %v3076_v23 = vadd.f32 %v3060_v30, %v2476_v16  ;;  %vm3561_vm5 = vmmov %vm3553_vm0 }
 0x17f   :  { %v3080_v60 = vadd.f32 %v3060_v30, %v2454_v48  ;;  %v3084_v47 = vadd.f32 %v3060_v30, %v2458_v53  ;;  %v3088_v49 = vadd.f32 %v3060_v30, %v2492_v42  ;;  %v3092_v1 = vadd.f32 %v3060_v30, %v2490_v38  ;;  %vm3566_vm3 = vmmov %vm3561_vm5 }
 0x180   :  { %v1137_v15 = vrot.slane %v3064_v3, 4  ;;  %v1143_v22 = vrot.slane %v3068_v2, 4  ;;  %v1149_v26 = vrot.slane %v3072_v46, 4  ;;  %v1155_v28 = vrot.slane %v3076_v23, 4 }
 0x181   :  { %v1161_v20 = vrot.slane %v3080_v60, 4  ;;  %v1167_v43 = vrot.slane %v3084_v47, 4  ;;  %v1173_v54 = vrot.slane %v3088_v49, 4  ;;  %v1179_v0 = vrot.slane %v3092_v1, 4 }
 0x182   :  { %v1138_v8 = vmax.f32 %v3064_v3, %v1137_v15  ;;  %v1144_v61 = vmax.f32 %v3068_v2, %v1143_v22  ;;  %v1150_v27 = vmax.f32 %v3072_v46, %v1149_v26  ;;  %v1156_v55 = vmax.f32 %v3076_v23, %v1155_v28 }
 0x183   :  { %v1162_v13 = vmax.f32 %v3080_v60, %v1161_v20  ;;  %v1168_v34 = vmax.f32 %v3084_v47, %v1167_v43  ;;  %v1174_v41 = vmax.f32 %v3088_v49, %v1173_v54  ;;  %v1180_v31 = vmax.f32 %v3092_v1, %v1179_v0 }
 0x184   :  { %v1139_v36 = vrot.slane %v1138_v8, 2  ;;  %v1145_v50 = vrot.slane %v1144_v61, 2  ;;  %v1151_v62 = vrot.slane %v1150_v27, 2  ;;  %v1157_v39 = vrot.slane %v1156_v55, 2 }
 0x185   :  { %v1163_v24 = vrot.slane %v1162_v13, 2  ;;  %v1169_v51 = vrot.slane %v1168_v34, 2  ;;  %v1175_v37 = vrot.slane %v1174_v41, 2  ;;  %v1181_v40 = vrot.slane %v1180_v31, 2 }
 0x186   :  { %v1140_v57 = vmax.f32 %v1138_v8, %v1139_v36  ;;  %v1146_v9 = vmax.f32 %v1144_v61, %v1145_v50  ;;  %v1152_v19 = vmax.f32 %v1150_v27, %v1151_v62  ;;  %v1158_v45 = vmax.f32 %v1156_v55, %v1157_v39 }
 0x187   :  { %v1164_v56 = vmax.f32 %v1162_v13, %v1163_v24  ;;  %v1170_v52 = vmax.f32 %v1168_v34, %v1169_v51  ;;  %v1176_v7 = vmax.f32 %v1174_v41, %v1175_v37  ;;  %v1182_v25 = vmax.f32 %v1180_v31, %v1181_v40 }
 0x188   :  { %v1141_v21 = vrot.slane %v1140_v57, 1  ;;  %v1147_v33 = vrot.slane %v1146_v9, 1  ;;  %v1153_v11 = vrot.slane %v1152_v19, 1  ;;  %v1159_v17 = vrot.slane %v1158_v45, 1 }
 0x189   :  { %v1165_v10 = vrot.slane %v1164_v56, 1  ;;  %v1171_v44 = vrot.slane %v1170_v52, 1  ;;  %v1177_v59 = vrot.slane %v1176_v7, 1  ;;  %v1183_v58 = vrot.slane %v1182_v25, 1 }
 0x18a   :  { %v3110_v15 = vmax.f32 %v1140_v57, %v1141_v21  ;;  %v3112_v22 = vmax.f32 %v1146_v9, %v1147_v33  ;;  %v3114_v26 = vmax.f32 %v1152_v19, %v1153_v11  ;;  %v3116_v28 = vmax.f32 %v1158_v45, %v1159_v17 }
 0x18b   :  { %v3118_v20 = vmax.f32 %v1164_v56, %v1165_v10  ;;  %v3120_v43 = vmax.f32 %v1170_v52, %v1171_v44  ;;  %v3122_v54 = vmax.f32 %v1176_v7, %v1177_v59  ;;  %v3124_v0 = vmax.f32 %v1182_v25, %v1183_v58 }
 0x18c   :  { %v1185_v8 = vsub.f32 %v3064_v3, %v3110_v15  ;;  %v1186_v61 = vsub.f32 %v3068_v2, %v3112_v22  ;;  %v1187_v27 = vsub.f32 %v3072_v46, %v3114_v26  ;;  %v1188_v55 = vsub.f32 %v3076_v23, %v3116_v28 }
 0x18d   :  { %v1189_v13 = vsub.f32 %v3080_v60, %v3118_v20  ;;  %v1190_v34 = vsub.f32 %v3084_v47, %v3120_v43  ;;  %v1191_v41 = vsub.f32 %v3088_v49, %v3122_v54  ;;  %v1192_v2 = vsub.f32 %v3092_v1, %v3124_v0 }
 0x18e   :  { %v1193_v31 = vmul.f32 1.442695, %v1185_v8  ;;  %v1195_v3 = vmul.f32 1.442695, %v1186_v61  ;;  %v1197_v36 = vmul.f32 1.442695, %v1187_v27  ;;  %vm3563_vm0 = vnez %v3525_v5 }
 0x18f   :  { %v1199_v50 = vmul.f32 1.442695, %v1188_v55  ;;  %v1201_v46 = vmul.f32 1.442695, %v1189_v13  ;;  %v1203_v23 = vmul.f32 1.442695, %v1190_v34 }
 0x190   :  { %2137 = vpow2.f32 %v1193_v31  ;;  %v1205_v62 = vmul.f32 1.442695, %v1191_v41  ;;  %v1207_v60 = vmul.f32 1.442695, %v1192_v2 }
 0x191   :  { %2139 = vpow2.f32 %v1195_v3 }
 0x192   :  { %2141 = vpow2.f32 %v1197_v36 }
 0x193   :  { %2143 = vpow2.f32 %v1199_v50 }
 0x194   :  { %2145 = vpow2.f32 %v1201_v46 }
 0x195   :  { %2147 = vpow2.f32 %v1203_v23 }
 0x196   :  { %v2138_v47 = vpop.eup %2137  ;;  %2149 = vpow2.f32 %v1205_v62 }
 0x197   :  { %v2140_v49 = vpop.eup %2139  ;;  %2151 = vpow2.f32 %v1207_v60  ;;  %v1209_v39 = vrot.slane %v2138_v47, 4 }
 0x198   :  { %v2142_v24 = vpop.eup %2141  ;;  %v1215_v51 = vrot.slane %v2140_v49, 4 }
 0x199   :  { %v2144_v37 = vpop.eup %2143  ;;  %v1210_v1 = vadd.f32 %v2138_v47, %v1209_v39  ;;  %v1221_v40 = vrot.slane %v2142_v24, 4 }
 0x19a   :  { %v2146_v57 = vpop.eup %2145  ;;  %v1216_v9 = vadd.f32 %v2140_v49, %v1215_v51  ;;  %v1227_v19 = vrot.slane %v2144_v37, 4 }
 0x19b   :  { %v2148_v45 = vpop.eup %2147  ;;  %v1211_v56 = vrot.slane %v1210_v1, 2  ;;  %v1222_v52 = vadd.f32 %v2142_v24, %v1221_v40  ;;  %v1233_v7 = vrot.slane %v2146_v57, 4 }
 0x19c   :  { %v2150_v25 = vpop.eup %2149  ;;  %v1217_v21 = vrot.slane %v1216_v9, 2  ;;  %v1228_v33 = vadd.f32 %v2144_v37, %v1227_v19  ;;  %v1239_v11 = vrot.slane %v2148_v45, 4 }
 0x19d   :  { %v2152_v17 = vpop.eup %2151  ;;  %v1212_v10 = vadd.f32 %v1211_v56, %v1210_v1  ;;  %v1223_v44 = vrot.slane %v1222_v52, 2  ;;  %v1234_v59 = vadd.f32 %v2146_v57, %v1233_v7  ;;  %v1245_v58 = vrot.slane %v2150_v25, 4 }
 0x19e   :  { %v1218_v8 = vadd.f32 %v1217_v21, %v1216_v9  ;;  %v1229_v61 = vrot.slane %v1228_v33, 2  ;;  %v1240_v27 = vadd.f32 %v2148_v45, %v1239_v11  ;;  %v1251_v55 = vrot.slane %v2152_v17, 4 }
 0x19f   :  { %v1213_v13 = vrot.slane %v1212_v10, 1  ;;  %v1224_v34 = vadd.f32 %v1223_v44, %v1222_v52  ;;  %v1235_v41 = vrot.slane %v1234_v59, 2  ;;  %v1246_v31 = vadd.f32 %v2150_v25, %v1245_v58 }
 0x1a0   :  { %v1219_v3 = vrot.slane %v1218_v8, 1  ;;  %v1230_v36 = vadd.f32 %v1229_v61, %v1228_v33  ;;  %v1241_v2 = vrot.slane %v1240_v27, 2  ;;  %v1252_v50 = vadd.f32 %v2152_v17, %v1251_v55 }
 0x1a1   :  { %v1214_v46 = vadd.f32 %v1213_v13, %v1212_v10  ;;  %v1225_v23 = vrot.slane %v1224_v34, 1  ;;  %v1236_v62 = vadd.f32 %v1235_v41, %v1234_v59  ;;  %v1247_v60 = vrot.slane %v1246_v31, 2 }
 0x1a2   :  { %v1220_v47 = vadd.f32 %v1219_v3, %v1218_v8  ;;  %v1231_v49 = vrot.slane %v1230_v36, 1  ;;  %v1242_v39 = vadd.f32 %v1241_v2, %v1240_v27  ;;  %v1253_v24 = vrot.slane %v1252_v50, 2 }
 0x1a3   :  { %v1226_v51 = vadd.f32 %v1225_v23, %v1224_v34  ;;  %v1237_v37 = vrot.slane %v1236_v62, 1  ;;  %v1248_v1 = vadd.f32 %v1247_v60, %v1246_v31  ;;  %2153 = vlog2.f32 %v1214_v46 }
 0x1a4   :  { %v1232_v40 = vadd.f32 %v1231_v49, %v1230_v36  ;;  %v1243_v57 = vrot.slane %v1242_v39, 1  ;;  %v1254_v9 = vadd.f32 %v1253_v24, %v1252_v50  ;;  %2155 = vlog2.f32 %v1220_v47 }
 0x1a5   :  { %v1238_v19 = vadd.f32 %v1237_v37, %v1236_v62  ;;  %v1249_v45 = vrot.slane %v1248_v1, 1  ;;  %2157 = vlog2.f32 %v1226_v51  ;;  %v1282_v59 = vrot.slane %v2596_v32, 1 }
 0x1a6   :  { %v1244_v56 = vadd.f32 %v1243_v57, %v1242_v39  ;;  %v1255_v52 = vrot.slane %v1254_v9, 1  ;;  %2159 = vlog2.f32 %v1232_v40  ;;  %v1283_v27 = vrot.slane %v2596_v32, 2 }
 0x1a7   :  { %v1250_v7 = vadd.f32 %v1249_v45, %v1248_v1  ;;  %2161 = vlog2.f32 %v1238_v19  ;;  %v1284_v55 = vrot.slane %v2596_v32, 3  ;;  %v1285_v31 = vrot.slane %v2596_v32, 4 }
 0x1a8   :  { %v1256_v25 = vadd.f32 %v1255_v52, %v1254_v9  ;;  %2163 = vlog2.f32 %v1244_v56  ;;  %v1286_v3 = vrot.slane %v2596_v32, 5  ;;  %v1287_v46 = vrot.slane %v2596_v32, 6 }
 0x1a9   :  { %v2154_v21 = vpop.eup %2153  ;;  %2165 = vlog2.f32 %v1250_v7 }
 0x1aa   :  { %v2156_v33 = vpop.eup %2155  ;;  %v1258_v11 = vmul.f32 0.6931472, %v2154_v21  ;;  %2167 = vlog2.f32 %v1256_v25 }
 0x1ab   :  { %v2158_v17 = vpop.eup %2157  ;;  %v1260_v10 = vmul.f32 0.6931472, %v2156_v33 }
 0x1ac   :  { %v2160_v44 = vpop.eup %2159  ;;  %v1262_v58 = vmul.f32 0.6931472, %v2158_v17  ;;  %v1273_v8 = vadd.f32 %v1258_v11, %v3110_v15 }
 0x1ad   :  { %v2162_v61 = vpop.eup %2161  ;;  %v1264_v13 = vmul.f32 0.6931472, %v2160_v44  ;;  %v1274_v34 = vadd.f32 %v1260_v10, %v3112_v22 }
 0x1ae   :  { %v2164_v41 = vpop.eup %2163  ;;  %v1266_v36 = vmul.f32 0.6931472, %v2162_v61  ;;  %v1275_v2 = vadd.f32 %v1262_v58, %v3114_v26  ;;  %v1297_v22 = vadd.f32 %v1273_v8, %v2596_v32  ;;  %v1288_v26 = vrot.slane %v2596_v32, 7 }
 0x1af   :  { %v2166_v50 = vpop.eup %2165  ;;  %v1268_v15 = vmul.f32 0.6931472, %v2164_v41  ;;  %v1276_v23 = vadd.f32 %v1264_v13, %v3116_v28  ;;  %v1298_v62 = vadd.f32 %v1282_v59, %v1274_v34 }
 0x1b0   :  { %v2168_v60 = vpop.eup %2167  ;;  %v1270_v47 = vmul.f32 0.6931472, %v2166_v50  ;;  %v1277_v49 = vadd.f32 %v1266_v36, %v3118_v20  ;;  %v1299_v39 = vadd.f32 %v1283_v27, %v1275_v2 }
 0x1b1   :  { %v1272_v24 = vmul.f32 0.6931472, %v2168_v60  ;;  %v1278_v51 = vadd.f32 %v1268_v15, %v3120_v43  ;;  %v1300_v37 = vadd.f32 %v1284_v55, %v1276_v23  ;;  %v1315_v1 = vrot.slane %v1298_v62, 7 }
 0x1b2   :  { %v1279_v40 = vadd.f32 %v1270_v47, %v3122_v54  ;;  %v1301_v57 = vadd.f32 %v1285_v31, %v1277_v49  ;;  %v1317_v9 = vrot.slane %v1299_v39, 6 }
 0x1b3   :  { %v1280_v28 = vadd.f32 %v1272_v24, %v3124_v0  ;;  %v1302_v19 = vadd.f32 %v1286_v3, %v1278_v51  ;;  %v1316_v45 = vsel %vm3559_vm9, %v1315_v1, %v1297_v22  ;;  %v1319_v20 = vrot.slane %v1300_v37, 5 }
 0x1b4   :  { %v1303_v56 = vadd.f32 %v1287_v46, %v1279_v40  ;;  %v1318_v52 = vsel %vm3560_vm10, %v1317_v9, %v1316_v45  ;;  %v1321_v7 = vrot.slane %v1301_v57, 4  ;;  %vm3571_vm10 = vmmov %vm3567_vm12 }
 0x1b5   :  { %v1304_v25 = vadd.f32 %v1288_v26, %v1280_v28  ;;  %v1320_v43 = vsel %vm3561_vm5, %v1319_v20, %v1318_v52  ;;  %v1323_v21 = vrot.slane %v1302_v19, 3  ;;  %vm3573_vm5 = vmmov %vm3565_vm7 }
 0x1b6   :  { %v1322_v32 = vsel %vm3562_vm15, %v1321_v7, %v1320_v43  ;;  %v1325_v33 = vrot.slane %v1303_v56, 2  ;;  %vm3574_vm15 = vmmov %vm3566_vm3 }
 0x1b7   :  { %v1324_v54 = vsel %vm493_vm6, %v1323_v21, %v1322_v32  ;;  %v1327_v11 = vrot.slane %v1304_v25, 1 }
 0x1b8   :  { %v1326_v0 = vsel %vm496_vm1, %v1325_v33, %v1324_v54 }
 0x1b9   :  { %v1328_v17 = vsel %vm499_vm2, %v1327_v11, %v1326_v0 }
 0x1ba   :  { %v3168_v10 = vsel %vm3563_vm0, %v1328_v17, %v3060_v30  ;;  %vm3575_vm0 = vmmov %vm3571_vm10 }
 0x1bb   :  { %v3172_v44 = vadd.f32 %v3168_v10, %v2468_v4  ;;  %v3176_v59 = vadd.f32 %v3168_v10, %v2470_v6  ;;  %v3180_v58 = vadd.f32 %v3168_v10, %v2478_v18  ;;  %v3184_v8 = vadd.f32 %v3168_v10, %v2476_v16 }
 0x1bc   :  { %v3188_v5 = vadd.f32 %v3168_v10, %v2454_v48  ;;  %v3192_v30 = vadd.f32 %v3168_v10, %v2458_v53  ;;  %v3196_v61 = vadd.f32 %v3168_v10, %v2492_v42  ;;  %v3200_v27 = vadd.f32 %v3168_v10, %v2490_v38 }
 0x1bd   :  { %v1344_v55 = vrot.slane %v3172_v44, 4  ;;  %v1350_v13 = vrot.slane %v3176_v59, 4  ;;  %v1356_v34 = vrot.slane %v3180_v58, 4  ;;  %v1362_v41 = vrot.slane %v3184_v8, 4 }
 0x1be   :  { %v1368_v31 = vrot.slane %v3188_v5, 4  ;;  %v1374_v3 = vrot.slane %v3192_v30, 4  ;;  %v1380_v36 = vrot.slane %v3196_v61, 4  ;;  %v1386_v2 = vrot.slane %v3200_v27, 4 }
 0x1bf   :  { %v1345_v50 = vmax.f32 %v3172_v44, %v1344_v55  ;;  %v1351_v46 = vmax.f32 %v3176_v59, %v1350_v13  ;;  %v1357_v15 = vmax.f32 %v3180_v58, %v1356_v34  ;;  %v1363_v23 = vmax.f32 %v3184_v8, %v1362_v41 }
 0x1c0   :  { %v1369_v62 = vmax.f32 %v3188_v5, %v1368_v31  ;;  %v1375_v60 = vmax.f32 %v3192_v30, %v1374_v3  ;;  %v1381_v47 = vmax.f32 %v3196_v61, %v1380_v36  ;;  %v1387_v49 = vmax.f32 %v3200_v27, %v1386_v2 }
 0x1c1   :  { %v1346_v22 = vrot.slane %v1345_v50, 2  ;;  %v1352_v39 = vrot.slane %v1351_v46, 2  ;;  %v1358_v24 = vrot.slane %v1357_v15, 2  ;;  %v1364_v51 = vrot.slane %v1363_v23, 2 }
 0x1c2   :  { %v1370_v37 = vrot.slane %v1369_v62, 2  ;;  %v1376_v1 = vrot.slane %v1375_v60, 2  ;;  %v1382_v26 = vrot.slane %v1381_v47, 2  ;;  %v1388_v40 = vrot.slane %v1387_v49, 2 }
 0x1c3   :  { %v1347_v57 = vmax.f32 %v1345_v50, %v1346_v22  ;;  %v1353_v9 = vmax.f32 %v1351_v46, %v1352_v39  ;;  %v1359_v28 = vmax.f32 %v1357_v15, %v1358_v24  ;;  %v1365_v19 = vmax.f32 %v1363_v23, %v1364_v51 }
 0x1c4   :  { %v1371_v45 = vmax.f32 %v1369_v62, %v1370_v37  ;;  %v1377_v20 = vmax.f32 %v1375_v60, %v1376_v1  ;;  %v1383_v56 = vmax.f32 %v1381_v47, %v1382_v26  ;;  %v1389_v52 = vmax.f32 %v1387_v49, %v1388_v40 }
 0x1c5   :  { %v1348_v7 = vrot.slane %v1347_v57, 1  ;;  %v1354_v25 = vrot.slane %v1353_v9, 1  ;;  %v1360_v43 = vrot.slane %v1359_v28, 1  ;;  %v1366_v21 = vrot.slane %v1365_v19, 1 }
 0x1c6   :  { %v1372_v32 = vrot.slane %v1371_v45, 1  ;;  %v1378_v33 = vrot.slane %v1377_v20, 1  ;;  %v1384_v54 = vrot.slane %v1383_v56, 1  ;;  %v1390_v11 = vrot.slane %v1389_v52, 1 }
 0x1c7   :  { %v3218_v0 = vmax.f32 %v1347_v57, %v1348_v7  ;;  %v3220_v17 = vmax.f32 %v1353_v9, %v1354_v25  ;;  %v3222_v55 = vmax.f32 %v1359_v28, %v1360_v43  ;;  %v3224_v13 = vmax.f32 %v1365_v19, %v1366_v21 }
 0x1c8   :  { %v3226_v34 = vmax.f32 %v1371_v45, %v1372_v32  ;;  %v3228_v41 = vmax.f32 %v1377_v20, %v1378_v33  ;;  %v3230_v31 = vmax.f32 %v1383_v56, %v1384_v54  ;;  %v3232_v3 = vmax.f32 %v1389_v52, %v1390_v11 }
 0x1c9   :  { %v1392_v36 = vsub.f32 %v3172_v44, %v3218_v0  ;;  %v1393_v2 = vsub.f32 %v3176_v59, %v3220_v17  ;;  %v1394_v50 = vsub.f32 %v3180_v58, %v3222_v55  ;;  %v1395_v46 = vsub.f32 %v3184_v8, %v3224_v13 }
 0x1ca   :  { %v1396_v15 = vsub.f32 %v3188_v5, %v3226_v34  ;;  %v1397_v23 = vsub.f32 %v3192_v30, %v3228_v41  ;;  %v1398_v62 = vsub.f32 %v3196_v61, %v3230_v31  ;;  %v1399_v59 = vsub.f32 %v3200_v27, %v3232_v3 }
 0x1cb   :  { %v1400_v60 = vmul.f32 1.442695, %v1392_v36  ;;  %v1402_v44 = vmul.f32 1.442695, %v1393_v2  ;;  %v1404_v47 = vmul.f32 1.442695, %v1394_v50 }
 0x1cc   :  { %v1406_v49 = vmul.f32 1.442695, %v1395_v46  ;;  %v1408_v58 = vmul.f32 1.442695, %v1396_v15  ;;  %v1410_v8 = vmul.f32 1.442695, %v1397_v23 }
 0x1cd   :  { %2169 = vpow2.f32 %v1400_v60  ;;  %v1412_v22 = vmul.f32 1.442695, %v1398_v62  ;;  %v1414_v5 = vmul.f32 1.442695, %v1399_v59 }
 0x1ce   :  { %2171 = vpow2.f32 %v1402_v44 }
 0x1cf   :  { %2173 = vpow2.f32 %v1404_v47 }
 0x1d0   :  { %2175 = vpow2.f32 %v1406_v49 }
 0x1d1   :  { %2177 = vpow2.f32 %v1408_v58 }
 0x1d2   :  { %2179 = vpow2.f32 %v1410_v8 }
 0x1d3   :  { %v2170_v30 = vpop.eup %2169  ;;  %2181 = vpow2.f32 %v1412_v22 }
 0x1d4   :  { %v2172_v61 = vpop.eup %2171  ;;  %2183 = vpow2.f32 %v1414_v5  ;;  %v1416_v39 = vrot.slane %v2170_v30, 4 }
 0x1d5   :  { %v2174_v24 = vpop.eup %2173  ;;  %v1422_v51 = vrot.slane %v2172_v61, 4 }
 0x1d6   :  { %v2176_v37 = vpop.eup %2175  ;;  %v1417_v27 = vadd.f32 %v2170_v30, %v1416_v39  ;;  %v1428_v1 = vrot.slane %v2174_v24, 4 }
 0x1d7   :  { %v2178_v26 = vpop.eup %2177  ;;  %v1423_v40 = vadd.f32 %v2172_v61, %v1422_v51  ;;  %v1434_v57 = vrot.slane %v2176_v37, 4 }
 0x1d8   :  { %v2180_v9 = vpop.eup %2179  ;;  %v1418_v28 = vrot.slane %v1417_v27, 2  ;;  %v1429_v19 = vadd.f32 %v2174_v24, %v1428_v1  ;;  %v1440_v45 = vrot.slane %v2178_v26, 4 }
 0x1d9   :  { %v2182_v20 = vpop.eup %2181  ;;  %v1424_v56 = vrot.slane %v1423_v40, 2  ;;  %v1435_v52 = vadd.f32 %v2176_v37, %v1434_v57  ;;  %v1446_v7 = vrot.slane %v2180_v9, 4 }
 0x1da   :  { %v2184_v25 = vpop.eup %2183  ;;  %v1419_v43 = vadd.f32 %v1418_v28, %v1417_v27  ;;  %v1430_v21 = vrot.slane %v1429_v19, 2  ;;  %v1441_v32 = vadd.f32 %v2178_v26, %v1440_v45  ;;  %v1452_v33 = vrot.slane %v2182_v20, 4 }
 0x1db   :  { %v1425_v54 = vadd.f32 %v1424_v56, %v1423_v40  ;;  %v1436_v11 = vrot.slane %v1435_v52, 2  ;;  %v1447_v36 = vadd.f32 %v2180_v9, %v1446_v7  ;;  %v1458_v2 = vrot.slane %v2184_v25, 4 }
 0x1dc   :  { %v1420_v50 = vrot.slane %v1419_v43, 1  ;;  %v1431_v46 = vadd.f32 %v1430_v21, %v1429_v19  ;;  %v1442_v15 = vrot.slane %v1441_v32, 2  ;;  %v1453_v23 = vadd.f32 %v2182_v20, %v1452_v33 }
 0x1dd   :  { %v1426_v62 = vrot.slane %v1425_v54, 1  ;;  %v1437_v60 = vadd.f32 %v1436_v11, %v1435_v52  ;;  %v1448_v44 = vrot.slane %v1447_v36, 2  ;;  %v1459_v47 = vadd.f32 %v2184_v25, %v1458_v2 }
 0x1de   :  { %v1421_v59 = vadd.f32 %v1420_v50, %v1419_v43  ;;  %v1432_v49 = vrot.slane %v1431_v46, 1  ;;  %v1443_v58 = vadd.f32 %v1442_v15, %v1441_v32  ;;  %v1454_v8 = vrot.slane %v1453_v23, 2 }
 0x1df   :  { %v1427_v22 = vadd.f32 %v1426_v62, %v1425_v54  ;;  %v1438_v5 = vrot.slane %v1437_v60, 1  ;;  %v1449_v30 = vadd.f32 %v1448_v44, %v1447_v36  ;;  %v1460_v61 = vrot.slane %v1459_v47, 2 }
 0x1e0   :  { %v1433_v39 = vadd.f32 %v1432_v49, %v1431_v46  ;;  %v1444_v24 = vrot.slane %v1443_v58, 1  ;;  %v1455_v51 = vadd.f32 %v1454_v8, %v1453_v23  ;;  %2185 = vlog2.f32 %v1421_v59 }
 0x1e1   :  { %v1439_v37 = vadd.f32 %v1438_v5, %v1437_v60  ;;  %v1450_v27 = vrot.slane %v1449_v30, 1  ;;  %v1461_v1 = vadd.f32 %v1460_v61, %v1459_v47  ;;  %2187 = vlog2.f32 %v1427_v22 }
 0x1e2   :  { %v1445_v26 = vadd.f32 %v1444_v24, %v1443_v58  ;;  %v1456_v40 = vrot.slane %v1455_v51, 1  ;;  %2189 = vlog2.f32 %v1433_v39  ;;  %v1489_v32 = vrot.slane %v2599_v29, 1 }
 0x1e3   :  { %v1451_v57 = vadd.f32 %v1450_v27, %v1449_v30  ;;  %v1462_v9 = vrot.slane %v1461_v1, 1  ;;  %2191 = vlog2.f32 %v1439_v37  ;;  %v1490_v36 = vrot.slane %v2599_v29, 2 }
 0x1e4   :  { %v1457_v28 = vadd.f32 %v1456_v40, %v1455_v51  ;;  %2193 = vlog2.f32 %v1445_v26  ;;  %v1491_v2 = vrot.slane %v2599_v29, 3  ;;  %v1492_v23 = vrot.slane %v2599_v29, 4 }
 0x1e5   :  { %v1463_v19 = vadd.f32 %v1462_v9, %v1461_v1  ;;  %2195 = vlog2.f32 %v1451_v57  ;;  %v1493_v62 = vrot.slane %v2599_v29, 5  ;;  %v1494_v47 = vrot.slane %v2599_v29, 6 }
 0x1e6   :  { %v2186_v45 = vpop.eup %2185  ;;  %2197 = vlog2.f32 %v1457_v28  ;;  %v1495_v24 = vrot.slane %v2599_v29, 7 }
 0x1e7   :  { %v2188_v20 = vpop.eup %2187  ;;  %v1465_v56 = vmul.f32 0.6931472, %v2186_v45  ;;  %2199 = vlog2.f32 %v1463_v19 }
 0x1e8   :  { %v2190_v52 = vpop.eup %2189  ;;  %v1467_v7 = vmul.f32 0.6931472, %v2188_v20 }
 0x1e9   :  { %v2192_v25 = vpop.eup %2191  ;;  %v1469_v43 = vmul.f32 0.6931472, %v2190_v52  ;;  %v1480_v21 = vadd.f32 %v1465_v56, %v3218_v0 }
 0x1ea   :  { %v2194_v33 = vpop.eup %2193  ;;  %v1471_v54 = vmul.f32 0.6931472, %v2192_v25  ;;  %v1481_v11 = vadd.f32 %v1467_v7, %v3220_v17 }
 0x1eb   :  { %v2196_v50 = vpop.eup %2195  ;;  %v1473_v46 = vmul.f32 0.6931472, %v2194_v33  ;;  %v1482_v15 = vadd.f32 %v1469_v43, %v3222_v55  ;;  %v1504_v8 = vadd.f32 %v1480_v21, %v2599_v29 }
 0x1ec   :  { %v2198_v60 = vpop.eup %2197  ;;  %v1475_v0 = vmul.f32 0.6931472, %v2196_v50  ;;  %v1483_v44 = vadd.f32 %v1471_v54, %v3224_v13  ;;  %v1505_v59 = vadd.f32 %v1489_v32, %v1481_v11 }
 0x1ed   :  { %v2200_v17 = vpop.eup %2199  ;;  %v1477_v49 = vmul.f32 0.6931472, %v2198_v60  ;;  %v1484_v58 = vadd.f32 %v1473_v46, %v3226_v34  ;;  %v1506_v22 = vadd.f32 %v1490_v36, %v1482_v15 }
 0x1ee   :  { %v1479_v5 = vmul.f32 0.6931472, %v2200_v17  ;;  %v1485_v55 = vadd.f32 %v1475_v0, %v3228_v41  ;;  %v1507_v30 = vadd.f32 %v1491_v2, %v1483_v44  ;;  %v1522_v61 = vrot.slane %v1505_v59, 7 }
 0x1ef   :  { %v1486_v39 = vadd.f32 %v1477_v49, %v3230_v31  ;;  %v1508_v13 = vadd.f32 %v1492_v23, %v1484_v58  ;;  %v1524_v51 = vrot.slane %v1506_v22, 6 }
 0x1f0   :  { %v1487_v37 = vadd.f32 %v1479_v5, %v3232_v3  ;;  %v1509_v27 = vadd.f32 %v1493_v62, %v1485_v55  ;;  %v1523_v1 = vsel %vm3564_vm13, %v1522_v61, %v1504_v8  ;;  %v1526_v34 = vrot.slane %v1507_v30, 5 }
 0x1f1   :  { %v1510_v26 = vadd.f32 %v1494_v47, %v1486_v39  ;;  %v1525_v40 = vsel %vm3565_vm7, %v1524_v51, %v1523_v1  ;;  %v1528_v57 = vrot.slane %v1508_v13, 4 }
 0x1f2   :  { %v1511_v9 = vadd.f32 %v1495_v24, %v1487_v37  ;;  %v1527_v41 = vsel %vm3566_vm3, %v1526_v34, %v1525_v40  ;;  %v1530_v28 = vrot.slane %v1509_v27, 3 }
 0x1f3   :  { %v1529_v31 = vsel %vm3567_vm12, %v1528_v57, %v1527_v41  ;;  %v1532_v19 = vrot.slane %v1510_v26, 2 }
 0x1f4   :  { %v1531_v29 = vsel %vm493_vm6, %v1530_v28, %v1529_v31  ;;  %v1534_v45 = vrot.slane %v1511_v9, 1 }
 0x1f5   :  { %v1533_v3 = vsel %vm496_vm1, %v1532_v19, %v1531_v29 }
 0x1f6   :  { %v1535_v20 = vsel %vm499_vm2, %v1534_v45, %v1533_v3 }
 0x1f7   :  { %v3276_v56 = vsel %vm2645_vm14, %v1535_v20, %v3168_v10  ;;  %vm3568_vm14 = vmmov %vm3559_vm9 }
 0x1f8   :  { %v3280_v52 = vadd.f32 %v3276_v56, %v2468_v4  ;;  %v3284_v7 = vadd.f32 %v3276_v56, %v2470_v6  ;;  %v3288_v25 = vadd.f32 %v3276_v56, %v2478_v18  ;;  %v3292_v43 = vadd.f32 %v3276_v56, %v2476_v16  ;;  %vm3570_vm9 = vmmov %vm3566_vm3 }
 0x1f9   :  { %v3296_v12 = vadd.f32 %v3276_v56, %v2454_v48  ;;  %v3300_v10 = vadd.f32 %v3276_v56, %v2458_v53  ;;  %v3304_v21 = vadd.f32 %v3276_v56, %v2492_v42  ;;  %v3308_v32 = vadd.f32 %v3276_v56, %v2490_v38 }
 0x1fa   :  { %v1551_v33 = vrot.slane %v3280_v52, 4  ;;  %v1557_v54 = vrot.slane %v3284_v7, 4  ;;  %v1563_v11 = vrot.slane %v3288_v25, 4  ;;  %v1569_v36 = vrot.slane %v3292_v43, 4 }
 0x1fb   :  { %v1575_v2 = vrot.slane %v3296_v12, 4  ;;  %v1581_v50 = vrot.slane %v3300_v10, 4  ;;  %v1587_v46 = vrot.slane %v3304_v21, 4  ;;  %v1593_v15 = vrot.slane %v3308_v32, 4 }
 0x1fc   :  { %v1552_v23 = vmax.f32 %v3280_v52, %v1551_v33  ;;  %v1558_v62 = vmax.f32 %v3284_v7, %v1557_v54  ;;  %v1564_v60 = vmax.f32 %v3288_v25, %v1563_v11  ;;  %v1570_v0 = vmax.f32 %v3292_v43, %v1569_v36 }
 0x1fd   :  { %v1576_v44 = vmax.f32 %v3296_v12, %v1575_v2  ;;  %v1582_v47 = vmax.f32 %v3300_v10, %v1581_v50  ;;  %v1588_v59 = vmax.f32 %v3304_v21, %v1587_v46  ;;  %v1594_v17 = vmax.f32 %v3308_v32, %v1593_v15 }
 0x1fe   :  { %v1553_v49 = vrot.slane %v1552_v23, 2  ;;  %v1559_v58 = vrot.slane %v1558_v62, 2  ;;  %v1565_v8 = vrot.slane %v1564_v60, 2  ;;  %v1571_v22 = vrot.slane %v1570_v0, 2 }
 0x1ff   :  { %v1577_v5 = vrot.slane %v1576_v44, 2  ;;  %v1583_v55 = vrot.slane %v1582_v47, 2  ;;  %v1589_v30 = vrot.slane %v1588_v59, 2  ;;  %v1595_v61 = vrot.slane %v1594_v17, 2 }
 0x200   :  { %v1554_v39 = vmax.f32 %v1552_v23, %v1553_v49  ;;  %v1560_v24 = vmax.f32 %v1558_v62, %v1559_v58  ;;  %v1566_v13 = vmax.f32 %v1564_v60, %v1565_v8  ;;  %v1572_v51 = vmax.f32 %v1570_v0, %v1571_v22 }
 0x201   :  { %v1578_v37 = vmax.f32 %v1576_v44, %v1577_v5  ;;  %v1584_v27 = vmax.f32 %v1582_v47, %v1583_v55  ;;  %v1590_v1 = vmax.f32 %v1588_v59, %v1589_v30  ;;  %v1596_v34 = vmax.f32 %v1594_v17, %v1595_v61 }
 0x202   :  { %v1555_v26 = vrot.slane %v1554_v39, 1  ;;  %v1561_v40 = vrot.slane %v1560_v24, 1  ;;  %v1567_v57 = vrot.slane %v1566_v13, 1  ;;  %v1573_v9 = vrot.slane %v1572_v51, 1 }
 0x203   :  { %v1579_v41 = vrot.slane %v1578_v37, 1  ;;  %v1585_v28 = vrot.slane %v1584_v27, 1  ;;  %v1591_v31 = vrot.slane %v1590_v1, 1  ;;  %v1597_v19 = vrot.slane %v1596_v34, 1 }
 0x204   :  { %v3326_v29 = vmax.f32 %v1554_v39, %v1555_v26  ;;  %v3328_v45 = vmax.f32 %v1560_v24, %v1561_v40  ;;  %v3330_v3 = vmax.f32 %v1566_v13, %v1567_v57  ;;  %v3332_v20 = vmax.f32 %v1572_v51, %v1573_v9 }
 0x205   :  { %v3334_v33 = vmax.f32 %v1578_v37, %v1579_v41  ;;  %v3336_v54 = vmax.f32 %v1584_v27, %v1585_v28  ;;  %v3338_v11 = vmax.f32 %v1590_v1, %v1591_v31  ;;  %v3340_v36 = vmax.f32 %v1596_v34, %v1597_v19 }
 0x206   :  { %v1599_v2 = vsub.f32 %v3280_v52, %v3326_v29  ;;  %v1600_v50 = vsub.f32 %v3284_v7, %v3328_v45  ;;  %v1601_v46 = vsub.f32 %v3288_v25, %v3330_v3  ;;  %v1602_v15 = vsub.f32 %v3292_v43, %v3332_v20 }
 0x207   :  { %v1603_v23 = vsub.f32 %v3296_v12, %v3334_v33  ;;  %v1604_v62 = vsub.f32 %v3300_v10, %v3336_v54  ;;  %v1605_v60 = vsub.f32 %v3304_v21, %v3338_v11  ;;  %v1606_v7 = vsub.f32 %v3308_v32, %v3340_v36 }
 0x208   :  { %v1607_v0 = vmul.f32 1.442695, %v1599_v2  ;;  %v1609_v52 = vmul.f32 1.442695, %v1600_v50  ;;  %v1611_v44 = vmul.f32 1.442695, %v1601_v46 }
 0x209   :  { %v1613_v47 = vmul.f32 1.442695, %v1602_v15  ;;  %v1615_v25 = vmul.f32 1.442695, %v1603_v23  ;;  %v1617_v43 = vmul.f32 1.442695, %v1604_v62 }
 0x20a   :  { %2201 = vpow2.f32 %v1607_v0  ;;  %v1619_v59 = vmul.f32 1.442695, %v1605_v60  ;;  %v1621_v12 = vmul.f32 1.442695, %v1606_v7 }
 0x20b   :  { %2203 = vpow2.f32 %v1609_v52 }
 0x20c   :  { %2205 = vpow2.f32 %v1611_v44 }
 0x20d   :  { %2207 = vpow2.f32 %v1613_v47 }
 0x20e   :  { %2209 = vpow2.f32 %v1615_v25 }
 0x20f   :  { %2211 = vpow2.f32 %v1617_v43 }
 0x210   :  { %v2202_v10 = vpop.eup %2201  ;;  %2213 = vpow2.f32 %v1619_v59 }
 0x211   :  { %v2204_v21 = vpop.eup %2203  ;;  %2215 = vpow2.f32 %v1621_v12  ;;  %v1623_v17 = vrot.slane %v2202_v10, 4 }
 0x212   :  { %v2206_v49 = vpop.eup %2205  ;;  %v1629_v58 = vrot.slane %v2204_v21, 4 }
 0x213   :  { %v2208_v8 = vpop.eup %2207  ;;  %v1624_v32 = vadd.f32 %v2202_v10, %v1623_v17  ;;  %v1635_v22 = vrot.slane %v2206_v49, 4 }
 0x214   :  { %v2210_v5 = vpop.eup %2209  ;;  %v1630_v55 = vadd.f32 %v2204_v21, %v1629_v58  ;;  %v1641_v30 = vrot.slane %v2208_v8, 4 }
 0x215   :  { %v2212_v61 = vpop.eup %2211  ;;  %v1625_v39 = vrot.slane %v1624_v32, 2  ;;  %v1636_v24 = vadd.f32 %v2206_v49, %v1635_v22  ;;  %v1647_v13 = vrot.slane %v2210_v5, 4 }
 0x216   :  { %v2214_v51 = vpop.eup %2213  ;;  %v1631_v37 = vrot.slane %v1630_v55, 2  ;;  %v1642_v27 = vadd.f32 %v2208_v8, %v1641_v30  ;;  %v1653_v1 = vrot.slane %v2212_v61, 4 }
 0x217   :  { %v2216_v34 = vpop.eup %2215  ;;  %v1626_v26 = vadd.f32 %v1625_v39, %v1624_v32  ;;  %v1637_v40 = vrot.slane %v1636_v24, 2  ;;  %v1648_v57 = vadd.f32 %v2210_v5, %v1647_v13  ;;  %v1659_v9 = vrot.slane %v2214_v51, 4 }
 0x218   :  { %v1632_v41 = vadd.f32 %v1631_v37, %v1630_v55  ;;  %v1643_v28 = vrot.slane %v1642_v27, 2  ;;  %v1654_v31 = vadd.f32 %v2212_v61, %v1653_v1  ;;  %v1665_v19 = vrot.slane %v2216_v34, 4 }
 0x219   :  { %v1627_v2 = vrot.slane %v1626_v26, 1  ;;  %v1638_v50 = vadd.f32 %v1637_v40, %v1636_v24  ;;  %v1649_v46 = vrot.slane %v1648_v57, 2  ;;  %v1660_v15 = vadd.f32 %v2214_v51, %v1659_v9 }
 0x21a   :  { %v1633_v23 = vrot.slane %v1632_v41, 1  ;;  %v1644_v62 = vadd.f32 %v1643_v28, %v1642_v27  ;;  %v1655_v60 = vrot.slane %v1654_v31, 2  ;;  %v1666_v0 = vadd.f32 %v2216_v34, %v1665_v19 }
 0x21b   :  { %v1628_v52 = vadd.f32 %v1627_v2, %v1626_v26  ;;  %v1639_v44 = vrot.slane %v1638_v50, 1  ;;  %v1650_v7 = vadd.f32 %v1649_v46, %v1648_v57  ;;  %v1661_v47 = vrot.slane %v1660_v15, 2 }
 0x21c   :  { %v1634_v25 = vadd.f32 %v1633_v23, %v1632_v41  ;;  %v1645_v43 = vrot.slane %v1644_v62, 1  ;;  %v1656_v59 = vadd.f32 %v1655_v60, %v1654_v31  ;;  %v1667_v12 = vrot.slane %v1666_v0, 2 }
 0x21d   :  { %v1640_v10 = vadd.f32 %v1639_v44, %v1638_v50  ;;  %v1651_v21 = vrot.slane %v1650_v7, 1  ;;  %v1662_v17 = vadd.f32 %v1661_v47, %v1660_v15  ;;  %2217 = vlog2.f32 %v1628_v52 }
 0x21e   :  { %v1646_v49 = vadd.f32 %v1645_v43, %v1644_v62  ;;  %v1657_v58 = vrot.slane %v1656_v59, 1  ;;  %v1668_v8 = vadd.f32 %v1667_v12, %v1666_v0  ;;  %2219 = vlog2.f32 %v1634_v25 }
 0x21f   :  { %v1652_v32 = vadd.f32 %v1651_v21, %v1650_v7  ;;  %v1663_v22 = vrot.slane %v1662_v17, 1  ;;  %2221 = vlog2.f32 %v1640_v10  ;;  %v1696_v26 = vrot.slane %v2602_v35, 1 }
 0x220   :  { %v1658_v5 = vadd.f32 %v1657_v58, %v1656_v59  ;;  %v1669_v55 = vrot.slane %v1668_v8, 1  ;;  %2223 = vlog2.f32 %v1646_v49  ;;  %v1697_v41 = vrot.slane %v2602_v35, 2 }
 0x221   :  { %v1664_v30 = vadd.f32 %v1663_v22, %v1662_v17  ;;  %2225 = vlog2.f32 %v1652_v32  ;;  %v1698_v28 = vrot.slane %v2602_v35, 3  ;;  %v1699_v50 = vrot.slane %v2602_v35, 4 }
 0x222   :  { %v1670_v61 = vadd.f32 %v1669_v55, %v1668_v8  ;;  %2227 = vlog2.f32 %v1658_v5  ;;  %v1700_v46 = vrot.slane %v2602_v35, 5  ;;  %v1701_v62 = vrot.slane %v2602_v35, 6 }
 0x223   :  { %v2218_v39 = vpop.eup %2217  ;;  %2229 = vlog2.f32 %v1664_v30  ;;  %v1702_v12 = vrot.slane %v2602_v35, 7 }
 0x224   :  { %v2220_v24 = vpop.eup %2219  ;;  %v1672_v13 = vmul.f32 0.6931472, %v2218_v39  ;;  %2231 = vlog2.f32 %v1670_v61 }
 0x225   :  { %v2222_v51 = vpop.eup %2221  ;;  %v1674_v37 = vmul.f32 0.6931472, %v2220_v24 }
 0x226   :  { %v2224_v27 = vpop.eup %2223  ;;  %v1676_v1 = vmul.f32 0.6931472, %v2222_v51  ;;  %v1687_v34 = vadd.f32 %v1672_v13, %v3326_v29 }
 0x227   :  { %v2226_v40 = vpop.eup %2225  ;;  %v1678_v57 = vmul.f32 0.6931472, %v2224_v27  ;;  %v1688_v9 = vadd.f32 %v1674_v37, %v3328_v45 }
 0x228   :  { %v2228_v31 = vpop.eup %2227  ;;  %v1680_v19 = vmul.f32 0.6931472, %v2226_v40  ;;  %v1689_v2 = vadd.f32 %v1676_v1, %v3330_v3  ;;  %v1711_v44 = vadd.f32 %v1687_v34, %v2602_v35 }
 0x229   :  { %v2230_v15 = vpop.eup %2229  ;;  %v1682_v29 = vmul.f32 0.6931472, %v2228_v31  ;;  %v1690_v23 = vadd.f32 %v1678_v57, %v3332_v20  ;;  %v1712_v60 = vadd.f32 %v1696_v26, %v1688_v9 }
 0x22a   :  { %v2232_v45 = vpop.eup %2231  ;;  %v1684_v0 = vmul.f32 0.6931472, %v2230_v15  ;;  %v1691_v52 = vadd.f32 %v1680_v19, %v3334_v33  ;;  %v1713_v7 = vadd.f32 %v1697_v41, %v1689_v2 }
 0x22b   :  { %v1686_v47 = vmul.f32 0.6931472, %v2232_v45  ;;  %v1692_v3 = vadd.f32 %v1682_v29, %v3336_v54  ;;  %v1714_v25 = vadd.f32 %v1698_v28, %v1690_v23  ;;  %v1729_v43 = vrot.slane %v1712_v60, 7 }
 0x22c   :  { %v1693_v59 = vadd.f32 %v1684_v0, %v3338_v11  ;;  %v1715_v20 = vadd.f32 %v1699_v50, %v1691_v52  ;;  %v1731_v10 = vrot.slane %v1713_v7, 6 }
 0x22d   :  { %v1694_v21 = vadd.f32 %v1686_v47, %v3340_v36  ;;  %v1716_v17 = vadd.f32 %v1700_v46, %v1692_v3  ;;  %v1730_v49 = vsel %vm3568_vm14, %v1729_v43, %v1711_v44  ;;  %v1733_v33 = vrot.slane %v1714_v25, 5 }
 0x22e   :  { %v1717_v58 = vadd.f32 %v1701_v62, %v1693_v59  ;;  %v1732_v8 = vsel %vm3569_vm8, %v1731_v10, %v1730_v49  ;;  %v1735_v32 = vrot.slane %v1715_v20, 4 }
 0x22f   :  { %v1718_v22 = vadd.f32 %v1702_v12, %v1694_v21  ;;  %v1734_v54 = vsel %vm3570_vm9, %v1733_v33, %v1732_v8  ;;  %v1737_v5 = vrot.slane %v1716_v17, 3 }
 0x230   :  { %v1736_v11 = vsel %vm3571_vm10, %v1735_v32, %v1734_v54  ;;  %v1739_v55 = vrot.slane %v1717_v58, 2 }
 0x231   :  { %v1738_v35 = vsel %vm493_vm6, %v1737_v5, %v1736_v11  ;;  %v1741_v30 = vrot.slane %v1718_v22, 1 }
 0x232   :  { %v1740_v36 = vsel %vm496_vm1, %v1739_v55, %v1738_v35 }
 0x233   :  { %v1742_v61 = vsel %vm499_vm2, %v1741_v30, %v1740_v36 }
 0x234   :  { %v3384_v39 = vsel %vm2654_vm11, %v1742_v61, %v3276_v56  ;;  %vm3572_vm11 = vmmov %vm3564_vm13 }
 0x235   :  { %v3388_v24 = vadd.f32 %v3384_v39, %v2468_v4  ;;  %v3392_v13 = vadd.f32 %v3384_v39, %v2470_v6  ;;  %v3396_v51 = vadd.f32 %v3384_v39, %v2478_v18  ;;  %v3400_v37 = vadd.f32 %v3384_v39, %v2476_v16 }
 0x236   :  { %v3404_v14 = vadd.f32 %v3384_v39, %v2454_v48  ;;  %v3408_v4 = vadd.f32 %v3384_v39, %v2458_v53  ;;  %v3412_v6 = vadd.f32 %v3384_v39, %v2492_v42  ;;  %v3416_v18 = vadd.f32 %v3384_v39, %v2490_v38 }
 0x237   :  { %v1758_v56 = vrot.slane %v3388_v24, 4  ;;  %v1764_v16 = vrot.slane %v3392_v13, 4  ;;  %v1770_v27 = vrot.slane %v3396_v51, 4  ;;  %v1776_v48 = vrot.slane %v3400_v37, 4 }
 0x238   :  { %v1782_v1 = vrot.slane %v3404_v14, 4  ;;  %v1788_v53 = vrot.slane %v3408_v4, 4  ;;  %v1794_v34 = vrot.slane %v3412_v6, 4  ;;  %v1800_v42 = vrot.slane %v3416_v18, 4 }
 0x239   :  { %v1759_v26 = vmax.f32 %v3388_v24, %v1758_v56  ;;  %v1765_v38 = vmax.f32 %v3392_v13, %v1764_v16  ;;  %v1771_v40 = vmax.f32 %v3396_v51, %v1770_v27  ;;  %v1777_v57 = vmax.f32 %v3400_v37, %v1776_v48 }
 0x23a   :  { %v1783_v9 = vmax.f32 %v3404_v14, %v1782_v1  ;;  %v1789_v41 = vmax.f32 %v3408_v4, %v1788_v53  ;;  %v1795_v28 = vmax.f32 %v3412_v6, %v1794_v34  ;;  %v1801_v31 = vmax.f32 %v3416_v18, %v1800_v42 }
 0x23b   :  { %v1760_v19 = vrot.slane %v1759_v26, 2  ;;  %v1766_v2 = vrot.slane %v1765_v38, 2  ;;  %v1772_v50 = vrot.slane %v1771_v40, 2  ;;  %v1778_v46 = vrot.slane %v1777_v57, 2 }
 0x23c   :  { %v1784_v15 = vrot.slane %v1783_v9, 2  ;;  %v1790_v29 = vrot.slane %v1789_v41, 2  ;;  %v1796_v23 = vrot.slane %v1795_v28, 2  ;;  %v1802_v62 = vrot.slane %v1801_v31, 2 }
 0x23d   :  { %v1761_v60 = vmax.f32 %v1759_v26, %v1760_v19  ;;  %v1767_v45 = vmax.f32 %v1765_v38, %v1766_v2  ;;  %v1773_v0 = vmax.f32 %v1771_v40, %v1772_v50  ;;  %v1779_v52 = vmax.f32 %v1777_v57, %v1778_v46 }
 0x23e   :  { %v1785_v44 = vmax.f32 %v1783_v9, %v1784_v15  ;;  %v1791_v7 = vmax.f32 %v1789_v41, %v1790_v29  ;;  %v1797_v47 = vmax.f32 %v1795_v28, %v1796_v23  ;;  %v1803_v3 = vmax.f32 %v1801_v31, %v1802_v62 }
 0x23f   :  { %v1762_v25 = vrot.slane %v1761_v60, 1  ;;  %v1768_v43 = vrot.slane %v1767_v45, 1  ;;  %v1774_v59 = vrot.slane %v1773_v0, 1  ;;  %v1780_v12 = vrot.slane %v1779_v52, 1 }
 0x240   :  { %v1786_v20 = vrot.slane %v1785_v44, 1  ;;  %v1792_v10 = vrot.slane %v1791_v7, 1  ;;  %v1798_v21 = vrot.slane %v1797_v47, 1  ;;  %v1804_v17 = vrot.slane %v1803_v3, 1 }
 0x241   :  { %v3434_v49 = vmax.f32 %v1761_v60, %v1762_v25  ;;  %v3436_v33 = vmax.f32 %v1767_v45, %v1768_v43  ;;  %v3438_v58 = vmax.f32 %v1773_v0, %v1774_v59  ;;  %v3440_v8 = vmax.f32 %v1779_v52, %v1780_v12 }
 0x242   :  { %v3442_v32 = vmax.f32 %v1785_v44, %v1786_v20  ;;  %v3444_v22 = vmax.f32 %v1791_v7, %v1792_v10  ;;  %v3446_v54 = vmax.f32 %v1797_v47, %v1798_v21  ;;  %v3448_v5 = vmax.f32 %v1803_v3, %v1804_v17 }
 0x243   :  { %v1806_v11 = vsub.f32 %v3388_v24, %v3434_v49  ;;  %v1807_v55 = vsub.f32 %v3392_v13, %v3436_v33  ;;  %v1808_v35 = vsub.f32 %v3396_v51, %v3438_v58  ;;  %v1809_v30 = vsub.f32 %v3400_v37, %v3440_v8 }
 0x244   :  { %v1810_v36 = vsub.f32 %v3404_v14, %v3442_v32  ;;  %v1811_v61 = vsub.f32 %v3408_v4, %v3444_v22  ;;  %v1812_v56 = vsub.f32 %v3412_v6, %v3446_v54  ;;  %v1813_v13 = vsub.f32 %v3416_v18, %v3448_v5 }
 0x245   :  { %v1814_v16 = vmul.f32 1.442695, %v1806_v11  ;;  %v1816_v24 = vmul.f32 1.442695, %v1807_v55  ;;  %v1818_v27 = vmul.f32 1.442695, %v1808_v35 }
 0x246   :  { %v1820_v48 = vmul.f32 1.442695, %v1809_v30  ;;  %v1822_v51 = vmul.f32 1.442695, %v1810_v36  ;;  %v1824_v37 = vmul.f32 1.442695, %v1811_v61 }
 0x247   :  { %2233 = vpow2.f32 %v1814_v16  ;;  %v1826_v1 = vmul.f32 1.442695, %v1812_v56  ;;  %v1828_v14 = vmul.f32 1.442695, %v1813_v13 }
 0x248   :  { %2235 = vpow2.f32 %v1816_v24 }
 0x249   :  { %2237 = vpow2.f32 %v1818_v27 }
 0x24a   :  { %2239 = vpow2.f32 %v1820_v48 }
 0x24b   :  { %2241 = vpow2.f32 %v1822_v51 }
 0x24c   :  { %2243 = vpow2.f32 %v1824_v37 }
 0x24d   :  { %v2234_v4 = vpop.eup %2233  ;;  %2245 = vpow2.f32 %v1826_v1 }
 0x24e   :  { %v2236_v6 = vpop.eup %2235  ;;  %2247 = vpow2.f32 %v1828_v14  ;;  %v1830_v53 = vrot.slane %v2234_v4, 4 }
 0x24f   :  { %v2238_v34 = vpop.eup %2237  ;;  %v1836_v42 = vrot.slane %v2236_v6, 4 }
 0x250   :  { %v2240_v26 = vpop.eup %2239  ;;  %v1831_v18 = vadd.f32 %v2234_v4, %v1830_v53  ;;  %v1842_v38 = vrot.slane %v2238_v34, 4 }
 0x251   :  { %v2242_v40 = vpop.eup %2241  ;;  %v1837_v57 = vadd.f32 %v2236_v6, %v1836_v42  ;;  %v1848_v9 = vrot.slane %v2240_v26, 4 }
 0x252   :  { %v2244_v41 = vpop.eup %2243  ;;  %v1832_v28 = vrot.slane %v1831_v18, 2  ;;  %v1843_v31 = vadd.f32 %v2238_v34, %v1842_v38  ;;  %v1854_v19 = vrot.slane %v2242_v40, 4 }
 0x253   :  { %v2246_v2 = vpop.eup %2245  ;;  %v1838_v50 = vrot.slane %v1837_v57, 2  ;;  %v1849_v46 = vadd.f32 %v2240_v26, %v1848_v9  ;;  %v1860_v15 = vrot.slane %v2244_v41, 4  ;;  %v1903_v9 = vrot.slane %v2715_v63, 1 }
 0x254   :  { %v2248_v29 = vpop.eup %2247  ;;  %v1833_v23 = vadd.f32 %v1832_v28, %v1831_v18  ;;  %v1844_v62 = vrot.slane %v1843_v31, 2  ;;  %v1855_v60 = vadd.f32 %v2242_v40, %v1854_v19  ;;  %v1866_v45 = vrot.slane %v2246_v2, 4 }
 0x255   :  { %v1839_v0 = vadd.f32 %v1838_v50, %v1837_v57  ;;  %v1850_v52 = vrot.slane %v1849_v46, 2  ;;  %v1861_v44 = vadd.f32 %v2244_v41, %v1860_v15  ;;  %v1872_v7 = vrot.slane %v2248_v29, 4 }
 0x256   :  { %v1834_v47 = vrot.slane %v1833_v23, 1  ;;  %v1845_v3 = vadd.f32 %v1844_v62, %v1843_v31  ;;  %v1856_v25 = vrot.slane %v1855_v60, 2  ;;  %v1867_v43 = vadd.f32 %v2246_v2, %v1866_v45 }
 0x257   :  { %v1840_v59 = vrot.slane %v1839_v0, 1  ;;  %v1851_v12 = vadd.f32 %v1850_v52, %v1849_v46  ;;  %v1862_v20 = vrot.slane %v1861_v44, 2  ;;  %v1873_v10 = vadd.f32 %v2248_v29, %v1872_v7 }
 0x258   :  { %v1835_v21 = vadd.f32 %v1834_v47, %v1833_v23  ;;  %v1846_v17 = vrot.slane %v1845_v3, 1  ;;  %v1857_v11 = vadd.f32 %v1856_v25, %v1855_v60  ;;  %v1868_v55 = vrot.slane %v1867_v43, 2 }
 0x259   :  { %v1841_v35 = vadd.f32 %v1840_v59, %v1839_v0  ;;  %v1852_v30 = vrot.slane %v1851_v12, 1  ;;  %v1863_v36 = vadd.f32 %v1862_v20, %v1861_v44  ;;  %v1874_v61 = vrot.slane %v1873_v10, 2 }
 0x25a   :  { %v1847_v56 = vadd.f32 %v1846_v17, %v1845_v3  ;;  %v1858_v16 = vrot.slane %v1857_v11, 1  ;;  %v1869_v24 = vadd.f32 %v1868_v55, %v1867_v43  ;;  %2249 = vlog2.f32 %v1835_v21 }
 0x25b   :  { %v1853_v27 = vadd.f32 %v1852_v30, %v1851_v12  ;;  %v1864_v13 = vrot.slane %v1863_v36, 1  ;;  %v1875_v48 = vadd.f32 %v1874_v61, %v1873_v10  ;;  %2251 = vlog2.f32 %v1841_v35 }
 0x25c   :  { %v1859_v51 = vadd.f32 %v1858_v16, %v1857_v11  ;;  %v1870_v37 = vrot.slane %v1869_v24, 1  ;;  %2253 = vlog2.f32 %v1847_v56  ;;  %v1904_v19 = vrot.slane %v2715_v63, 2  ;;  %v1961_v16 = vpop.permute.xlu0 %1960 }
 0x25d   :  { %v1865_v1 = vadd.f32 %v1864_v13, %v1863_v36  ;;  %v1876_v14 = vrot.slane %v1875_v48, 1  ;;  %2255 = vlog2.f32 %v1853_v27  ;;  %v1905_v2 = vrot.slane %v2715_v63, 3 }
 0x25e   :  { %v1871_v4 = vadd.f32 %v1870_v37, %v1869_v24  ;;  %2257 = vlog2.f32 %v1859_v51  ;;  %v1906_v29 = vrot.slane %v2715_v63, 4  ;;  %v1907_v23 = vrot.slane %v2715_v63, 5 }
 0x25f   :  { %v1877_v6 = vadd.f32 %v1876_v14, %v1875_v48  ;;  %2259 = vlog2.f32 %v1865_v1  ;;  %v1908_v45 = vrot.slane %v2715_v63, 6  ;;  %v1909_v12 = vrot.slane %v2715_v63, 7 }
 0x260   :  { %v2250_v53 = vpop.eup %2249  ;;  %2261 = vlog2.f32 %v1871_v4 }
 0x261   :  { %v2252_v34 = vpop.eup %2251  ;;  %v1879_v42 = vmul.f32 0.6931472, %v2250_v53  ;;  %2263 = vlog2.f32 %v1877_v6 }
 0x262   :  { %v2254_v26 = vpop.eup %2253  ;;  %v1881_v18 = vmul.f32 0.6931472, %v2252_v34 }
 0x263   :  { %v2256_v38 = vpop.eup %2255  ;;  %v1883_v40 = vmul.f32 0.6931472, %v2254_v26  ;;  %v1894_v57 = vadd.f32 %v1879_v42, %v3434_v49 }
 0x264   :  { %v2258_v41 = vpop.eup %2257  ;;  %v1885_v28 = vmul.f32 0.6931472, %v2256_v38  ;;  %v1895_v31 = vadd.f32 %v1881_v18, %v3436_v33  ;;  %v3577_v18 = vld [vmem:[#allocation3_spill] sm:$0xff] }
 0x265   :  { %v2260_v50 = vpop.eup %2259  ;;  %v1887_v46 = vmul.f32 0.6931472, %v2258_v41  ;;  %v1896_v15 = vadd.f32 %v1883_v40, %v3438_v58  ;;  %v1918_v7 = vadd.f32 %v1894_v57, %v2715_v63  ;;  %v1982_v38 = vrot.slane %v3577_v18, 4 }
 0x266   :  { %v2262_v62 = vpop.eup %2261  ;;  %v1889_v49 = vmul.f32 0.6931472, %v2260_v50  ;;  %v1897_v60 = vadd.f32 %v1885_v28, %v3440_v8  ;;  %v1919_v0 = vadd.f32 %v1903_v9, %v1895_v31 }
 0x267   :  { %v2264_v33 = vpop.eup %2263  ;;  %v1891_v52 = vmul.f32 0.6931472, %v2262_v62  ;;  %v1898_v44 = vadd.f32 %v1887_v46, %v3442_v32  ;;  %v1920_v47 = vadd.f32 %v1904_v19, %v1896_v15  ;;  %v1983_v9 = vadd.f32 %v1982_v38, %v3577_v18 }
 0x268   :  { %v1893_v3 = vmul.f32 0.6931472, %v2264_v33  ;;  %v1899_v58 = vadd.f32 %v1889_v49, %v3444_v22  ;;  %v1921_v25 = vadd.f32 %v1905_v2, %v1897_v60  ;;  %v1936_v43 = vrot.slane %v1919_v0, 7 }
 0x269   :  { %v1900_v59 = vadd.f32 %v1891_v52, %v3446_v54  ;;  %v1922_v8 = vadd.f32 %v1906_v29, %v1898_v44  ;;  %v1938_v20 = vrot.slane %v1920_v47, 6  ;;  %v1984_v28 = vrot.slane %v1983_v9, 2 }
 0x26a   :  { %v1901_v10 = vadd.f32 %v1893_v3, %v3448_v5  ;;  %v1923_v21 = vadd.f32 %v1907_v23, %v1899_v58  ;;  %v1937_v17 = vsel %vm3572_vm11, %v1936_v43, %v1918_v7  ;;  %v1940_v32 = vrot.slane %v1921_v25, 5 }
 0x26b   :  { %v1924_v11 = vadd.f32 %v1908_v45, %v1900_v59  ;;  %v1939_v55 = vsel %vm3573_vm5, %v1938_v20, %v1937_v17  ;;  %v1942_v35 = vrot.slane %v1922_v8, 4  ;;  %v1985_v19 = vadd.f32 %v1984_v28, %v1983_v9 }
 0x26c   :  { %v1925_v30 = vadd.f32 %v1909_v12, %v1901_v10  ;;  %v1941_v22 = vsel %vm3574_vm15, %v1940_v32, %v1939_v55  ;;  %v1944_v36 = vrot.slane %v1923_v21, 3 }
 0x26d   :  { %v1943_v54 = vsel %vm3575_vm0, %v1942_v35, %v1941_v22  ;;  %v1946_v61 = vrot.slane %v1924_v11, 2  ;;  %v1986_v2 = vrot.slane %v1985_v19, 1 }
 0x26e   :  { %v1945_v63 = vsel %vm493_vm6, %v1944_v36, %v1943_v54  ;;  %v1948_v56 = vrot.slane %v1925_v30, 1 }
 0x26f   :  { %v1947_v5 = vsel %vm496_vm1, %v1946_v61, %v1945_v63  ;;  %v1987_v29 = vadd.f32 %v1986_v2, %v1985_v19 }
 0x270   :  { %v1949_v24 = vsel %vm499_vm2, %v1948_v56, %v1947_v5 }
 0x271   :  { %v1951_v13 = vsel %vm2698_vm4, %v1949_v24, %v3384_v39 }
 0x272   :  { %v1963_v48 = vadd.f32 %v1961_v16, %v1951_v13 }
 0x274   :  { %v1964_v51 = vrot.slane %v1963_v48, 4 }
 0x276   :  { %v1965_v37 = vmax.f32 %v1963_v48, %v1964_v51 }
 0x278   :  { %v1966_v1 = vrot.slane %v1965_v37, 2 }
 0x27a   :  { %v1967_v14 = vmax.f32 %v1965_v37, %v1966_v1 }
 0x27c   :  { %v1968_v4 = vrot.slane %v1967_v14, 1 }
 0x27e   :  { %v1969_v6 = vmax.f32 %v1967_v14, %v1968_v4 }
 0x280   :  { %v1970_v53 = vsub.f32 %v1963_v48, %v1969_v6 }
 0x282   :  { %v1971_v34 = vmul.f32 1.442695, %v1970_v53 }
 0x284   :  { %2265 = vpow2.f32 %v1971_v34 }
 0x28a   :  { %v2266_v42 = vpop.eup %2265 }
 0x28b   :  { %v1973_v26 = vrot.slane %v2266_v42, 4 }
 0x28d   :  { %v1974_v40 = vadd.f32 %v2266_v42, %v1973_v26 }
 0x28f   :  { %v1975_v57 = vrot.slane %v1974_v40, 2 }
 0x291   :  { %v1976_v41 = vadd.f32 %v1975_v57, %v1974_v40 }
 0x293   :  { %v1977_v39 = vrot.slane %v1976_v41, 1 }
 0x295   :  { %v1978_v31 = vadd.f32 %v1977_v39, %v1976_v41 }
 0x297   :  { %2267 = vlog2.f32 %v1978_v31 }
 0x29d   :  { %v2268_v50 = vpop.eup %2267 }
 0x29e   :  { %v1980_v46 = vmul.f32 0.6931472, %v2268_v50 }
 0x2a0   :  { %v1981_v15 = vadd.f32 %v1980_v46, %v1969_v6 }
 0x2a2   :  { %v1988_v23 = vsub.f32 %v1981_v15, %v1987_v29 }
 0x2a4   :  { %1989 = vst [vmem:[%s3504_s7] sm:$0x1] %v1988_v23 }

</bundles_post_ra>
